<compile_context>
chip_gen: v7x
topology: tpu7x:2x2x1
jax: 0.10.0
libtpu: 0.0.40
codegen_flags: <defaults>
</compile_context>

<pallas_src>
import jax
import jax.numpy as jnp
from jax.experimental import pallas as pl
from jax.experimental.pallas import tpu as pltpu


_DILATIONS = (6, 12, 18)

# Flip to jnp.bfloat16 on v6e/v7x for 2x MXU throughput at production shapes
# (accumulation stays f32).  Kept f32 here so the f32 reference check is tight.
_COMPUTE_DTYPE = jnp.float32


# --------------------------- static tap analysis -----------------------------

def _offcenter_taps(H, W, d):
    """Off-centre 3x3 taps (dilation d, padding d) whose dilated window touches
    real input.  Returns (tap_slot, out-slice, in-slice) as static ints."""
    taps = []
    for ky in range(3):
        for kx in range(3):
            if ky == 1 and kx == 1:
                continue
            dy, dx = (ky - 1) * d, (kx - 1) * d
            oy0, oy1 = max(0, -dy), min(H, H - dy)
            ox0, ox1 = max(0, -dx), min(W, W - dx)
            if oy0 >= oy1 or ox0 >= ox1:
                continue                      # window lies entirely in zero pad
            taps.append((ky * 3 + kx,
                         (oy0, oy1, ox0, ox1),
                         (oy0 + dy, oy1 + dy, ox0 + dx, ox1 + dx)))
    return taps


def _fold_plan(H, W):
    """Static plan of every off-centre tap folded into the wide RHS, in the
    exact column order used by prepare_params() and the kernel."""
    plan = []
    for bi, d in enumerate(_DILATIONS):           # bi: 0 -> d=6, 1 -> 12, 2 -> 18
        for slot, osl, isl in _offcenter_taps(H, W, d):
            plan.append((bi, slot, osl, isl))
    return tuple(plan)


def _pick_batch_block(N, H, W):
    """Fold batch into the matmul M dim, but keep the grid >= 2 steps so the
    default double-buffered pipeline and v7x's two TensorCores stay busy."""
    nb = 1
    while (N % (nb * 2) == 0) and (N // (nb * 2) >= 2) and (nb * H * W < 128):
        nb *= 2
    return nb


# ------------------------------ fused kernel ---------------------------------

def _make_fused_kernel(NB, H, W, C, plan, compute_dtype):
    M = NB * H * W
    T = len(plan)
    KT = (5 + T) * C

    def kernel(x_ref, wf_ref, b0_ref, bf_ref, o_ref, acc_ref):
        # One wide MXU dot: every branch / tap is a column block of the RHS.
        xc = x_ref[...].reshape(M, C).astype(compute_dtype)
        y = jnp.dot(xc, wf_ref[...].astype(compute_dtype),
                    preferred_element_type=jnp.float32)          # (M, KT) f32
        y = y.reshape(NB, H, W, KT)

        # layer6_0: global avg-pool folded through its 1x1 conv (linear ops
        # commute) -> bias -> ReLU -> spatial broadcast.  One lane-dense store.
        g = jnp.mean(y[:, :, :, 0:C].reshape(NB, H * W, C), axis=1) + b0_ref[...]
        g = jnp.maximum(g, 0.0)
        o_ref[:, :, :, 0:C] = jnp.broadcast_to(
            g[:, None, None, :], (NB, H, W, C)).astype(o_ref.dtype)

        # Conv branches [1x1 | d=6 | d=12 | d=18]: centre taps + biases into the
        # f32 accumulator scratch (no RMW on o_ref, no double rounding).
        acc_ref[...] = y[:, :, :, C:5 * C] + bf_ref[...].reshape(1, 1, 1, 4 * C)

        # Off-centre dilated taps: add the shifted spatial slice of the tap's
        # column block into its branch's channel group of the accumulator.
        for t, (bi, _slot, (oy0, oy1, ox0, ox1), (iy0, iy1, ix0, ix1)) in enumerate(plan):
            c0 = (1 + bi) * C                    # lane-aligned branch offset
            col0 = (5 + t) * C                   # lane-aligned column offset
            acc_ref[:, oy0:oy1, ox0:ox1, c0:c0 + C] += (
                y[:, iy0:iy1, ix0:ix1, col0:col0 + C])

        # ReLU + ONE unmasked lane-dense store of all four conv branches.
        o_ref[:, :, :, C:5 * C] = jnp.maximum(acc_ref[...], 0.0).astype(o_ref.dtype)

    return kernel


# ------------------------------ parameters -----------------------------------

def init_params(key, C):
    ks = jax.random.split(key, 10)
    w1x1 = lambda k: jax.random.normal(k, (C, C), jnp.float32) * 0.05
    w3x3 = lambda k: jax.random.normal(k, (9, C, C), jnp.float32) * 0.05
    bias = lambda k: jax.random.normal(k, (C,), jnp.float32) * 0.01
    return dict(w0=w1x1(ks[0]), b0=bias(ks[1]),
                w1=w1x1(ks[2]), b1=bias(ks[3]),
                w2=w3x3(ks[4]), b2=bias(ks[5]),
                w3=w3x3(ks[6]), b3=bias(ks[7]),
                w4=w3x3(ks[8]), b4=bias(ks[9]))


def prepare_params(params, H, W):
    """Hoisted (once-per-params) packing of the fused RHS and biases."""
    C = params["w0"].shape[0]
    plan = _fold_plan(H, W)
    wkeys = ("w2", "w3", "w4")
    cols = [params["w0"], params["w1"],
            params["w2"][4], params["w3"][4], params["w4"][4]]
    for bi, slot, _osl, _isl in plan:
        cols.append(params[wkeys[bi]][slot])
    wf_all = jnp.concatenate(cols, axis=1)                       # (C, (5+T)*C)
    b0 = params["b0"].reshape(1, C)
    bf = jnp.concatenate([params["b1"], params["b2"],
                          params["b3"], params["b4"]]).reshape(1, 4 * C)
    return {"wf_all": wf_all, "b0": b0, "bf": bf}


# ------------------------------ forward pass ---------------------------------

@jax.jit
def pspnet_forward(x_nchw, prepared):
    N, C, H, W = x_nchw.shape
    x = jnp.transpose(x_nchw, (0, 2, 3, 1))                      # NHWC, C on lanes

    plan = _fold_plan(H, W)
    T = len(plan)
    KT = (5 + T) * C
    NB = _pick_batch_block(N, H, W)
    kernel = _make_fused_kernel(NB, H, W, C, plan, _COMPUTE_DTYPE)

    out_nhwc = pl.pallas_call(
        kernel,
        out_shape=jax.ShapeDtypeStruct((N, H, W, 5 * C), x.dtype),
        grid=(N // NB,),
        in_specs=[
            pl.BlockSpec((NB, H, W, C), lambda n: (n, 0, 0, 0)),
            pl.BlockSpec((C, KT), lambda n: (0, 0)),
            pl.BlockSpec((1, C), lambda n: (0, 0)),
            pl.BlockSpec((1, 4 * C), lambda n: (0, 0)),
        ],
        out_specs=pl.BlockSpec((NB, H, W, 5 * C), lambda n: (n, 0, 0, 0)),
        scratch_shapes=[pltpu.VMEM((NB, H, W, 4 * C), jnp.float32)],
        compiler_params=pltpu.CompilerParams(
            dimension_semantics=("parallel",)),
    )(x, prepared["wf_all"], prepared["b0"], prepared["bf"])

    # Single NHWC->NCHW transpose, then cheap channel slices (module contract
    # requires six NCHW tensors; NHWC consumers should read out_nhwc directly).
    out = jnp.transpose(out_nhwc, (0, 3, 1, 2))
    gf = out[:, 0:C]                                             # == out_mid
    f1 = out[:, C:2 * C]
    f2 = out[:, 2 * C:3 * C]
    f3 = out[:, 3 * C:4 * C]
    f4 = out[:, 4 * C:5 * C]
    return out, gf, f1, f2, f3, f4


# ------------------------------ XLA reference ---------------------------------

def _reference_forward(x_nchw, params):
    """Pure-XLA mirror of the PyTorch module (eval mode), HIGHEST precision."""
    N, C, H, W = x_nchw.shape
    hp = jax.lax.Precision.HIGHEST
    x = jnp.transpose(x_nchw, (0, 2, 3, 1))
    g = jnp.mean(x, axis=(1, 2))
    g = jax.nn.relu(jnp.dot(g, params["w0"], precision=hp) + params["b0"])
    gf = jnp.broadcast_to(g[:, None, None, :], (N, H, W, C))
    f1 = jax.nn.relu(
        jnp.einsum("nhwc,co->nhwo", x, params["w1"], precision=hp) + params["b1"])

    def dilated(wt, b, d):
        xp = jnp.pad(x, ((0, 0), (d, d), (d, d), (0, 0)))
        acc = jnp.zeros((N, H, W, C), jnp.float32)
        for ky in range(3):
            for kx in range(3):
                tap = xp[:, ky * d:ky * d + H, kx * d:kx * d + W, :]
                acc = acc + jnp.einsum("nhwc,co->nhwo", tap, wt[ky * 3 + kx],
                                       precision=hp)
        return jax.nn.relu(acc + b)

    f2 = dilated(params["w2"], params["b2"], 6)
    f3 = dilated(params["w3"], params["b3"], 12)
    f4 = dilated(params["w4"], params["b4"], 18)
    out = jnp.concatenate([gf, f1, f2, f3, f4], axis=-1)
    to_nchw = lambda t: jnp.transpose(t, (0, 3, 1, 2))
    return tuple(to_nchw(t) for t in (out, gf, f1, f2, f3, f4))


# ----------------------------------- main --------------------------------------

if __name__ == "__main__":
    key = jax.random.PRNGKey(0)
    k_x, k_p = jax.random.split(key)

    N, C, H, W = 2, 128, 8, 8          # small lane-aligned synthetic shapes
    x = jax.random.normal(k_x, (N, C, H, W), dtype=jnp.float32)
    params = init_params(k_p, C)
    prepared = prepare_params(params, H, W)     # hoisted weight packing (once)

    outs = jax.block_until_ready(pspnet_forward(x, prepared))
    out, out_mid, f1, f2, f3, f4 = outs

    assert out.shape == (N, 5 * C, H, W)
    assert out_mid.shape == (N, C, H, W)
    assert f1.shape == f2.shape == f3.shape == f4.shape == (N, C, H, W)

    refs = jax.block_until_ready(jax.jit(_reference_forward)(x, params))
    names = ("out", "out_mid", "f1", "f2", "f3", "f4")
    for got, want, name in zip(outs, refs, names):
        err = float(jnp.max(jnp.abs(got - want)))
        assert jnp.allclose(got, want, atol=5e-3, rtol=5e-3), (
            "%s: max abs diff vs reference = %f" % (name, err))

    print("KERNEL_OK")
</pallas_src>

<mosaic_0001>
module attributes {stable_mosaic.version = 11 : i64} {
  func.func @kernel(%arg0: i32, %arg1: memref<1x8x8x128xf32, #tpu.memory_space<vmem>>, %arg2: memref<128x1664xf32, #tpu.memory_space<vmem>>, %arg3: memref<1x128xf32, #tpu.memory_space<vmem>>, %arg4: memref<1x512xf32, #tpu.memory_space<vmem>>, %arg5: memref<1x8x8x640xf32, #tpu.memory_space<vmem>>, %arg6: memref<1x8x8x512xf32, #tpu.memory_space<vmem>>) attributes {dimension_semantics = [#tpu.dimension_semantics<parallel>], iteration_bounds = array<i64: 2>, scalar_prefetch = 0 : i64, scratch_operands = 1 : i64, tpu.core_type = #tpu.core_type<tc>, window_params = [{transform_indices = @transform_0, window_bounds = array<i64: 1, 8, 8, 128>}, {pipeline_mode = #tpu.pipeline_mode<synchronous>, transform_indices = @transform_1, window_bounds = array<i64: 128, 1664>}, {pipeline_mode = #tpu.pipeline_mode<synchronous>, transform_indices = @transform_2, window_bounds = array<i64: 1, 128>}, {pipeline_mode = #tpu.pipeline_mode<synchronous>, transform_indices = @transform_3, window_bounds = array<i64: 1, 512>}, {transform_indices = @transform_4, window_bounds = array<i64: 1, 8, 8, 640>}]} {
    %c0 = arith.constant 0 : index
    %c0_0 = arith.constant 0 : index
    %c0_1 = arith.constant 0 : index
    %c0_2 = arith.constant 0 : index
    %0 = vector.load %arg1[%c0, %c0_0, %c0_1, %c0_2] : memref<1x8x8x128xf32, #tpu.memory_space<vmem>>, vector<1x8x8x128xf32>
    %1 = vector.shape_cast %0 : vector<1x8x8x128xf32> to vector<64x128xf32>
    %c0_3 = arith.constant 0 : index
    %c0_4 = arith.constant 0 : index
    %2 = vector.load %arg2[%c0_3, %c0_4] : memref<128x1664xf32, #tpu.memory_space<vmem>>, vector<128x1664xf32>
    %cst = arith.constant dense<0.000000e+00> : vector<64x1664xf32>
    %3 = tpu.matmul %1, %2, %cst {dimension_numbers = #tpu.dot_dimension_numbers<[1], [0], [0], [1], [0, 0, 1, 1], [], []>} : vector<64x128xf32>, vector<128x1664xf32>, vector<64x1664xf32> -> vector<64x1664xf32>
    %4 = vector.shape_cast %3 : vector<64x1664xf32> to vector<1x8x8x1664xf32>
    %5 = vector.extract_strided_slice %4 {offsets = [0, 0, 0, 0], sizes = [1, 8, 8, 128], strides = [1, 1, 1, 1]} : vector<1x8x8x1664xf32> to vector<1x8x8x128xf32>
    %6 = vector.shape_cast %5 : vector<1x8x8x128xf32> to vector<1x64x128xf32>
    %cst_5 = arith.constant dense<0.000000e+00> : vector<1x128xf32>
    %7 = vector.multi_reduction <add>, %6, %cst_5 [1] : vector<1x64x128xf32> to vector<1x128xf32>
    %cst_6 = arith.constant 6.400000e+01 : f32
    %8 = vector.broadcast %cst_6 : f32 to vector<1x128xf32>
    %9 = arith.divf %7, %8 : vector<1x128xf32>
    %c0_7 = arith.constant 0 : index
    %c0_8 = arith.constant 0 : index
    %10 = vector.load %arg3[%c0_7, %c0_8] : memref<1x128xf32, #tpu.memory_space<vmem>>, vector<1x128xf32>
    %11 = arith.addf %9, %10 : vector<1x128xf32>
    %cst_9 = arith.constant 0.000000e+00 : f32
    %12 = vector.broadcast %cst_9 : f32 to vector<1x128xf32>
    %13 = arith.maximumf %11, %12 : vector<1x128xf32>
    %14 = vector.shape_cast %13 : vector<1x128xf32> to vector<1x1x1x128xf32>
    %15 = vector.shape_cast %14 : vector<1x1x1x128xf32> to vector<1x1x1x128xf32>
    %16 = vector.broadcast %15 : vector<1x1x1x128xf32> to vector<1x8x8x128xf32>
    %c0_10 = arith.constant 0 : index
    %c0_11 = arith.constant 0 : index
    %c0_12 = arith.constant 0 : index
    %c0_13 = arith.constant 0 : index
    %17 = vector.load %arg5[%c0_10, %c0_11, %c0_12, %c0_13] : memref<1x8x8x640xf32, #tpu.memory_space<vmem>>, vector<1x8x8x128xf32>
    tpu.vector_store %arg5[%c0_10, %c0_11, %c0_12, %c0_13], %16 {strides = array<i32>} : memref<1x8x8x640xf32, #tpu.memory_space<vmem>>, vector<1x8x8x128xf32>,
    %18 = vector.extract_strided_slice %4 {offsets = [0, 0, 0, 128], sizes = [1, 8, 8, 512], strides = [1, 1, 1, 1]} : vector<1x8x8x1664xf32> to vector<1x8x8x512xf32>
    %c0_14 = arith.constant 0 : index
    %c0_15 = arith.constant 0 : index
    %19 = vector.load %arg4[%c0_14, %c0_15] : memref<1x512xf32, #tpu.memory_space<vmem>>, vector<1x512xf32>
    %20 = vector.shape_cast %19 : vector<1x512xf32> to vector<1x1x1x512xf32>
    %21 = vector.broadcast %20 : vector<1x1x1x512xf32> to vector<1x8x8x512xf32>
    %22 = arith.addf %18, %21 : vector<1x8x8x512xf32>
    %c0_16 = arith.constant 0 : index
    %c0_17 = arith.constant 0 : index
    %c0_18 = arith.constant 0 : index
    %c0_19 = arith.constant 0 : index
    %23 = vector.load %arg6[%c0_16, %c0_17, %c0_18, %c0_19] : memref<1x8x8x512xf32, #tpu.memory_space<vmem>>, vector<1x8x8x512xf32>
    tpu.vector_store %arg6[%c0_16, %c0_17, %c0_18, %c0_19], %22 {strides = array<i32>} : memref<1x8x8x512xf32, #tpu.memory_space<vmem>>, vector<1x8x8x512xf32>,
    %c0_20 = arith.constant 0 : index
    %c6 = arith.constant 6 : index
    %c6_21 = arith.constant 6 : index
    %c128 = arith.constant 128 : index
    %24 = vector.load %arg6[%c0_20, %c6, %c6_21, %c128] : memref<1x8x8x512xf32, #tpu.memory_space<vmem>>, vector<1x2x2x128xf32>
    %25 = vector.extract_strided_slice %4 {offsets = [0, 0, 0, 640], sizes = [1, 2, 2, 128], strides = [1, 1, 1, 1]} : vector<1x8x8x1664xf32> to vector<1x2x2x128xf32>
    %26 = arith.addf %24, %25 : vector<1x2x2x128xf32>
    %c0_22 = arith.constant 0 : index
    %c6_23 = arith.constant 6 : index
    %c6_24 = arith.constant 6 : index
    %c128_25 = arith.constant 128 : index
    %27 = vector.load %arg6[%c0_22, %c6_23, %c6_24, %c128_25] : memref<1x8x8x512xf32, #tpu.memory_space<vmem>>, vector<1x2x2x128xf32>
    tpu.vector_store %arg6[%c0_22, %c6_23, %c6_24, %c128_25], %26 {strides = array<i32>} : memref<1x8x8x512xf32, #tpu.memory_space<vmem>>, vector<1x2x2x128xf32>,
    %c0_26 = arith.constant 0 : index
    %c6_27 = arith.constant 6 : index
    %c0_28 = arith.constant 0 : index
    %c128_29 = arith.constant 128 : index
    %28 = vector.load %arg6[%c0_26, %c6_27, %c0_28, %c128_29] : memref<1x8x8x512xf32, #tpu.memory_space<vmem>>, vector<1x2x8x128xf32>
    %29 = vector.extract_strided_slice %4 {offsets = [0, 0, 0, 768], sizes = [1, 2, 8, 128], strides = [1, 1, 1, 1]} : vector<1x8x8x1664xf32> to vector<1x2x8x128xf32>
    %30 = arith.addf %28, %29 : vector<1x2x8x128xf32>
    %c0_30 = arith.constant 0 : index
    %c6_31 = arith.constant 6 : index
    %c0_32 = arith.constant 0 : index
    %c128_33 = arith.constant 128 : index
    %31 = vector.load %arg6[%c0_30, %c6_31, %c0_32, %c128_33] : memref<1x8x8x512xf32, #tpu.memory_space<vmem>>, vector<1x2x8x128xf32>
    tpu.vector_store %arg6[%c0_30, %c6_31, %c0_32, %c128_33], %30 {strides = array<i32>} : memref<1x8x8x512xf32, #tpu.memory_space<vmem>>, vector<1x2x8x128xf32>,
    %c0_34 = arith.constant 0 : index
    %c6_35 = arith.constant 6 : index
    %c0_36 = arith.constant 0 : index
    %c128_37 = arith.constant 128 : index
    %32 = vector.load %arg6[%c0_34, %c6_35, %c0_36, %c128_37] : memref<1x8x8x512xf32, #tpu.memory_space<vmem>>, vector<1x2x2x128xf32>
    %33 = vector.extract_strided_slice %4 {offsets = [0, 0, 6, 896], sizes = [1, 2, 2, 128], strides = [1, 1, 1, 1]} : vector<1x8x8x1664xf32> to vector<1x2x2x128xf32>
    %34 = arith.addf %32, %33 : vector<1x2x2x128xf32>
    %c0_38 = arith.constant 0 : index
    %c6_39 = arith.constant 6 : index
    %c0_40 = arith.constant 0 : index
    %c128_41 = arith.constant 128 : index
    %35 = vector.load %arg6[%c0_38, %c6_39, %c0_40, %c128_41] : memref<1x8x8x512xf32, #tpu.memory_space<vmem>>, vector<1x2x2x128xf32>
    tpu.vector_store %arg6[%c0_38, %c6_39, %c0_40, %c128_41], %34 {strides = array<i32>} : memref<1x8x8x512xf32, #tpu.memory_space<vmem>>, vector<1x2x2x128xf32>,
    %c0_42 = arith.constant 0 : index
    %c0_43 = arith.constant 0 : index
    %c6_44 = arith.constant 6 : index
    %c128_45 = arith.constant 128 : index
    %36 = vector.load %arg6[%c0_42, %c0_43, %c6_44, %c128_45] : memref<1x8x8x512xf32, #tpu.memory_space<vmem>>, vector<1x8x2x128xf32>
    %37 = vector.extract_strided_slice %4 {offsets = [0, 0, 0, 1024], sizes = [1, 8, 2, 128], strides = [1, 1, 1, 1]} : vector<1x8x8x1664xf32> to vector<1x8x2x128xf32>
    %38 = arith.addf %36, %37 : vector<1x8x2x128xf32>
    %c0_46 = arith.constant 0 : index
    %c0_47 = arith.constant 0 : index
    %c6_48 = arith.constant 6 : index
    %c128_49 = arith.constant 128 : index
    %39 = vector.load %arg6[%c0_46, %c0_47, %c6_48, %c128_49] : memref<1x8x8x512xf32, #tpu.memory_space<vmem>>, vector<1x8x2x128xf32>
    tpu.vector_store %arg6[%c0_46, %c0_47, %c6_48, %c128_49], %38 {strides = array<i32>} : memref<1x8x8x512xf32, #tpu.memory_space<vmem>>, vector<1x8x2x128xf32>,
    %c0_50 = arith.constant 0 : index
    %c0_51 = arith.constant 0 : index
    %c0_52 = arith.constant 0 : index
    %c128_53 = arith.constant 128 : index
    %40 = vector.load %arg6[%c0_50, %c0_51, %c0_52, %c128_53] : memref<1x8x8x512xf32, #tpu.memory_space<vmem>>, vector<1x8x2x128xf32>
    %41 = vector.extract_strided_slice %4 {offsets = [0, 0, 6, 1152], sizes = [1, 8, 2, 128], strides = [1, 1, 1, 1]} : vector<1x8x8x1664xf32> to vector<1x8x2x128xf32>
    %42 = arith.addf %40, %41 : vector<1x8x2x128xf32>
    %c0_54 = arith.constant 0 : index
    %c0_55 = arith.constant 0 : index
    %c0_56 = arith.constant 0 : index
    %c128_57 = arith.constant 128 : index
    %43 = vector.load %arg6[%c0_54, %c0_55, %c0_56, %c128_57] : memref<1x8x8x512xf32, #tpu.memory_space<vmem>>, vector<1x8x2x128xf32>
    tpu.vector_store %arg6[%c0_54, %c0_55, %c0_56, %c128_57], %42 {strides = array<i32>} : memref<1x8x8x512xf32, #tpu.memory_space<vmem>>, vector<1x8x2x128xf32>,
    %c0_58 = arith.constant 0 : index
    %c0_59 = arith.constant 0 : index
    %c6_60 = arith.constant 6 : index
    %c128_61 = arith.constant 128 : index
    %44 = vector.load %arg6[%c0_58, %c0_59, %c6_60, %c128_61] : memref<1x8x8x512xf32, #tpu.memory_space<vmem>>, vector<1x2x2x128xf32>
    %45 = vector.extract_strided_slice %4 {offsets = [0, 6, 0, 1280], sizes = [1, 2, 2, 128], strides = [1, 1, 1, 1]} : vector<1x8x8x1664xf32> to vector<1x2x2x128xf32>
    %46 = arith.addf %44, %45 : vector<1x2x2x128xf32>
    %c0_62 = arith.constant 0 : index
    %c0_63 = arith.constant 0 : index
    %c6_64 = arith.constant 6 : index
    %c128_65 = arith.constant 128 : index
    %47 = vector.load %arg6[%c0_62, %c0_63, %c6_64, %c128_65] : memref<1x8x8x512xf32, #tpu.memory_space<vmem>>, vector<1x2x2x128xf32>
    tpu.vector_store %arg6[%c0_62, %c0_63, %c6_64, %c128_65], %46 {strides = array<i32>} : memref<1x8x8x512xf32, #tpu.memory_space<vmem>>, vector<1x2x2x128xf32>,
    %c0_66 = arith.constant 0 : index
    %c0_67 = arith.constant 0 : index
    %c0_68 = arith.constant 0 : index
    %c128_69 = arith.constant 128 : index
    %48 = vector.load %arg6[%c0_66, %c0_67, %c0_68, %c128_69] : memref<1x8x8x512xf32, #tpu.memory_space<vmem>>, vector<1x2x8x128xf32>
    %49 = vector.extract_strided_slice %4 {offsets = [0, 6, 0, 1408], sizes = [1, 2, 8, 128], strides = [1, 1, 1, 1]} : vector<1x8x8x1664xf32> to vector<1x2x8x128xf32>
    %50 = arith.addf %48, %49 : vector<1x2x8x128xf32>
    %c0_70 = arith.constant 0 : index
    %c0_71 = arith.constant 0 : index
    %c0_72 = arith.constant 0 : index
    %c128_73 = arith.constant 128 : index
    %51 = vector.load %arg6[%c0_70, %c0_71, %c0_72, %c128_73] : memref<1x8x8x512xf32, #tpu.memory_space<vmem>>, vector<1x2x8x128xf32>
    tpu.vector_store %arg6[%c0_70, %c0_71, %c0_72, %c128_73], %50 {strides = array<i32>} : memref<1x8x8x512xf32, #tpu.memory_space<vmem>>, vector<1x2x8x128xf32>,
    %c0_74 = arith.constant 0 : index
    %c0_75 = arith.constant 0 : index
    %c0_76 = arith.constant 0 : index
    %c128_77 = arith.constant 128 : index
    %52 = vector.load %arg6[%c0_74, %c0_75, %c0_76, %c128_77] : memref<1x8x8x512xf32, #tpu.memory_space<vmem>>, vector<1x2x2x128xf32>
    %53 = vector.extract_strided_slice %4 {offsets = [0, 6, 6, 1536], sizes = [1, 2, 2, 128], strides = [1, 1, 1, 1]} : vector<1x8x8x1664xf32> to vector<1x2x2x128xf32>
    %54 = arith.addf %52, %53 : vector<1x2x2x128xf32>
    %c0_78 = arith.constant 0 : index
    %c0_79 = arith.constant 0 : index
    %c0_80 = arith.constant 0 : index
    %c128_81 = arith.constant 128 : index
    %55 = vector.load %arg6[%c0_78, %c0_79, %c0_80, %c128_81] : memref<1x8x8x512xf32, #tpu.memory_space<vmem>>, vector<1x2x2x128xf32>
    tpu.vector_store %arg6[%c0_78, %c0_79, %c0_80, %c128_81], %54 {strides = array<i32>} : memref<1x8x8x512xf32, #tpu.memory_space<vmem>>, vector<1x2x2x128xf32>,
    %c0_82 = arith.constant 0 : index
    %c0_83 = arith.constant 0 : index
    %c0_84 = arith.constant 0 : index
    %c0_85 = arith.constant 0 : index
    %56 = vector.load %arg6[%c0_82, %c0_83, %c0_84, %c0_85] : memref<1x8x8x512xf32, #tpu.memory_space<vmem>>, vector<1x8x8x512xf32>
    %cst_86 = arith.constant 0.000000e+00 : f32
    %57 = vector.broadcast %cst_86 : f32 to vector<1x8x8x512xf32>
    %58 = arith.maximumf %56, %57 : vector<1x8x8x512xf32>
    %c0_87 = arith.constant 0 : index
    %c0_88 = arith.constant 0 : index
    %c0_89 = arith.constant 0 : index
    %c128_90 = arith.constant 128 : index
    %59 = vector.load %arg5[%c0_87, %c0_88, %c0_89, %c128_90] : memref<1x8x8x640xf32, #tpu.memory_space<vmem>>, vector<1x8x8x512xf32>
    tpu.vector_store %arg5[%c0_87, %c0_88, %c0_89, %c128_90], %58 {strides = array<i32>} : memref<1x8x8x640xf32, #tpu.memory_space<vmem>>, vector<1x8x8x512xf32>,
    return
  }
  func.func @transform_0(%arg0: i32) -> (i32, i32, i32, i32) {
    %c0_i32 = arith.constant 0 : i32
    %c0_i32_0 = arith.constant 0 : i32
    %c0_i32_1 = arith.constant 0 : i32
    %c0_i32_2 = arith.constant 0 : i32
    return %arg0, %c0_i32, %c0_i32_0, %c0_i32_1 : i32, i32, i32, i32
  }
  func.func @transform_1(%arg0: i32) -> (i32, i32) {
    %c0_i32 = arith.constant 0 : i32
    %c0_i32_0 = arith.constant 0 : i32
    %c0_i32_1 = arith.constant 0 : i32
    return %c0_i32, %c0_i32_0 : i32, i32
  }
  func.func @transform_2(%arg0: i32) -> (i32, i32) {
    %c0_i32 = arith.constant 0 : i32
    %c0_i32_0 = arith.constant 0 : i32
    %c0_i32_1 = arith.constant 0 : i32
    return %c0_i32, %c0_i32_0 : i32, i32
  }
  func.func @transform_3(%arg0: i32) -> (i32, i32) {
    %c0_i32 = arith.constant 0 : i32
    %c0_i32_0 = arith.constant 0 : i32
    %c0_i32_1 = arith.constant 0 : i32
    return %c0_i32, %c0_i32_0 : i32, i32
  }
  func.func @transform_4(%arg0: i32) -> (i32, i32, i32, i32) {
    %c0_i32 = arith.constant 0 : i32
    %c0_i32_0 = arith.constant 0 : i32
    %c0_i32_1 = arith.constant 0 : i32
    %c0_i32_2 = arith.constant 0 : i32
    return %arg0, %c0_i32, %c0_i32_0, %c0_i32_1 : i32, i32, i32, i32
  }
}

</mosaic_0001>

<bundles_post_ra>
// kernel: pspnet_forward.1
= control target key start
LH: loop header
LB: loop body
LE: loop exit
PB: predicated region body
PF: predicated region fallthrough
CT: control target
= control target key end

     0   :  { %9 = vsyncpa [#allocation4], 0  ;;  %s2532_s0 = inlined_call_operand.hbm [shape: f32[2,8,8,128], index: 0, kind: input, shape index: {}]   ;;  %s2533_s1 = inlined_call_operand.hbm [shape: f32[128,1664], index: 1, kind: input, shape index: {}]   ;;  %s2534_s2 = inlined_call_operand.vmem [shape: f32[1,128], index: 2, kind: input, shape index: {}]   ;;  %s2535_s3 = inlined_call_operand.vmem [shape: f32[1,512], index: 3, kind: input, shape index: {}]   ;;  %s2536_s4 = inlined_call_operand.vmem [shape: f32[2,8,8,640], index: 4, kind: output, shape index: {}]  }
   0x1   :  { %11 = vsyncpa [#allocation4 + $0x1], 0 }
   0x2   :  { %12 = vsyncpa [#allocation6], 0  ;;  %s2150_s15 = smov 0   ;;  %s2152_s16 = smov 0  }
   0x3   :  { %s2154_s17 = smov 0   ;;  %s2156_s18 = smov 0  }
   0x4 LB: > { %s2169_s19 = sadd.s32 4294967295, %s2116_s18   ;;  %p38_p0 = scmp.ne.s32.totalorder %s2108_s16, %s2104_s15  ;;  %s2116_s18 = sphi %s2156_s18, %s2551_s18   ;;  %s2112_s17 = sphi %s2154_s17, %s2550_s17   ;;  %s2108_s16 = sphi %s2152_s16, %s2549_s16   ;;  %s2104_s15 = sphi %s2150_s15, %s2548_s15  }
   0x5   : > { %p2537_p1 = scmp.eq.s32.totalorder %s2169_s19, 0  ;;  %p1643_p2 = scmp.ge.s32.totalorder %s2116_s18, 1 }
   0x6   : > { %p138_p3 = scmp.lt.s32.totalorder %s2116_s18, 3  ;;  %s2118_s22 = smov [#allocation5]  }
   0x7   : > { %p2177_p4 = por %p2537_p1, %p38_p0  ;;  %s150_s23 = sshll.u32 %s2118_s22, 4  ;;  %s151_s23 = int_to_ptr.vmem [resolvable:$true] %s150_s23 }
   0x8   : > { %p2181_p5 = pnand %p1643_p2, %p138_p3  ;;  %s2194_s25 = sadd.s32 1, %s2116_s18  }
   0x9   : > { %s2540_s20 = scalar_select %p2177_p4, 1, 0 }
   0xa   : > { %s2541_s21 = scalar_select %p2181_p5, 1, 0 }
   0xb   : > { %p1971_p6 = pneg %p2181_p5  ;;  %s25_s26 = sadd.s32 1, %s2112_s17 }
   0xc   : > { %s22_s27 = ssub.s32 %s2116_s18, %s2194_s25  ;;  %s2020_s30 = scalar_lea.hbm %s2533_s1, 26624 }
   0xd   : > { %p2189_p7 = pnand %p1971_p6, %p2537_p1  ;;  %p2021_p8 = scmp.ne.s32.totalorder %s2533_s1, %s2020_s30 }
   0xe   : > { %p2027_p12 = scmp.lt.u32.totalorder %s2020_s30, %s2533_s1 }
   0xf   : > { %p2022_p9 = pneg %p2189_p7 }
  0x11   : > { %p2023_p10 = pnand %p2022_p9, %p2021_p8 }
  0x13   : > { %p2024_p11 = pneg %p2023_p10 }
  0x15   : > { %p2029_p13 = pnand %p2027_p12, %p2024_p11 }
  0x17   : > { %2032 = shalt.err (!%p2029_p13)
}
  0x18   : > { %s2033_s9 = scalar_lea.vmem %s151_s23, 26624  ;;  %p2041_p6 = scmp.lt.s32.totalorder %s151_s23, %s151_s23 }
  0x19   : > { %p2034_p0 = scmp.ne.s32.totalorder %s151_s23, %s2033_s9  ;;  %p2042_p1 = scmp.lt.s32.totalorder %s2033_s9, %s2033_s9 }
  0x1b   : > { %p2036_p2 = pnand %p2034_p0, %p2022_p9  ;;  %p2043_p4 = por %p2042_p1, %p2041_p6 }
  0x1d   : > { %p2037_p3 = pneg %p2036_p2 }
  0x1f   : > { %p2044_p5 = pnand %p2043_p4, %p2037_p3 }
  0x21   : > { %2047 = shalt.err (!%p2044_p5)
}
  0x22   : > { %s2119_s10 = smov 1664   ;;  %s2120_s11 = smov 104  }
  0x23   : > { %1974 = dma.hbm_to_vmem [thread:$0]  (!%p2189_p7), %s2533_s1, 26624, %s151_s23, [#allocation6], %s2119_s10, %s2119_s10, %s2120_s11  }
  0x24   : > { %p23_p8 = scmp.eq.s32.totalorder %s22_s27, 0  ;;  %p32_p9 = scmp.ne.s32.totalorder %s2112_s17, %s2108_s16 }
  0x25   : > { %p33_p1 = scmp.eq.s32.totalorder %s2116_s18, 0  ;;  %p1980_p4 = scmp.lt.s32.totalorder %s2116_s18, 2 }
  0x26   : > { %s2220_s14 = scalar_select %p23_p8, %s2112_s17, %s25_s26  }
  0x27   : > { %p34_p5 = por %p33_p1, %p32_p9  ;;  %s170_s15 = sand.u32 1, %s2112_s17  }
  0x28   : > { %s1646_s22 = sshll.u32 %s170_s15, 6  ;;  %s1655_s28 = sshll.u32 %s2116_s18, 10 }
  0x29   : > { %s2227_s5 = scalar_lea.hbm %s2532_s0, %s1655_s28  ;;  %s174_s23 = scalar_lea.vmem [#allocation3], %s1646_s22 }
  0x2a   : > { %s181_s24 = sshll.u32 %s174_s23, 4  ;;  %p2231_p7 = pnand %p1980_p4, %p34_p5  ;;  %s2229_s24 = int_to_ptr.vmem [resolvable:$true] %s181_s24 }
  0x2b   : > { %s2235_s18 = scalar_lea.sflag [#allocation4], %s170_s15  ;;  %s2048_s27 = scalar_lea.hbm %s2227_s5, 1024 }
  0x2c   : > { %p2049_p10 = scmp.ne.s32.totalorder %s2227_s5, %s2048_s27  ;;  %p2050_p11 = pneg %p2231_p7 }
  0x2d   : > { %s2053_s8 = scalar_lea.hbm %s2532_s0, 2048  ;;  %p2054_p0 = scmp.lt.u32.totalorder %s2227_s5, %s2532_s0 }
  0x2e   : > { %p2051_p12 = pnand %p2050_p11, %p2049_p10  ;;  %p2055_p2 = scmp.lt.u32.totalorder %s2053_s8, %s2048_s27 }
  0x2f   : > { %p2057_p6 = scmp.lt.u32.totalorder %s2048_s27, %s2227_s5 }
  0x30   : > { %p2052_p13 = pneg %p2051_p12  ;;  %p2056_p3 = por %p2055_p2, %p2054_p0 }
  0x32   : > { %p2058_p8 = por %p2057_p6, %p2056_p3 }
  0x34   : > { %p2059_p9 = pnand %p2058_p8, %p2052_p13 }
  0x36   : > { %2062 = shalt.err (!%p2059_p9)
}
  0x37   : > { %s2063_s11 = scalar_lea.vmem %s2229_s24, 1024  ;;  %s2121_s12 = smov [#allocation3]  }
  0x38   : > { %p2064_p1 = scmp.ne.s32.totalorder %s2229_s24, %s2063_s11  ;;  %s2068_s13 = sshll.u32 %s2121_s12, 4  ;;  %s2069_s13 = int_to_ptr.vmem [resolvable:$false] %s2068_s13 }
  0x39   : > { %s2070_s15 = scalar_lea.vmem %s2069_s13, 2048  ;;  %p2071_p10 = scmp.lt.s32.totalorder %s2229_s24, %s2069_s13 }
  0x3a   : > { %p2066_p4 = pnand %p2064_p1, %p2050_p11  ;;  %p2072_p12 = scmp.lt.s32.totalorder %s2070_s15, %s2063_s11 }
  0x3c   : > { %p2067_p5 = pneg %p2066_p4  ;;  %p2073_p0 = por %p2072_p12, %p2071_p10 }
  0x3e   : > { %p2074_p2 = pnand %p2073_p0, %p2067_p5 }
  0x40   : > { %2077 = shalt.err (!%p2074_p2)
}
  0x41   : > { %s2122_s22 = smov 128   ;;  %s2123_s28 = smov 8  }
  0x42   : > { %1978 = dma.hbm_to_vmem [thread:$0]  (!%p2231_p7), %s2227_s5, 1024, %s2229_s24, %s2235_s18, %s2122_s22, %s2122_s22, %s2123_s28  }
  0x43   : > { %p2544_p11 = scmp.ne.s32.totalorder %s2541_s21, 0 }
  0x44   : > { %s195_s29 = sand.u32 (!%p2544_p11), 1, %s2108_s16   ;;  %p2545_p13 = scmp.ne.s32.totalorder (!%p2544_p11), %s2540_s20, 0 }
  0x45   : > { %193 = sbr.rel (%p2544_p11) target bundleno = 455 (0x1c7), region = 36  ;;  %s1650_s30 = sshll.u32 (!%p2544_p11), %s195_s29, 6 }
  0x46   : > { %s196_s23 = scalar_lea.sflag (!%p2544_p11), [#allocation4], %s195_s29  ;;  %s2266_s27 = scalar_lea.vmem (!%p2544_p11), [#allocation3], %s1650_s30 }
  0x4c   : > { %2095 = dma.done.wait (%p2545_p13), %s196_s23, 1024  }
  0x4d   : > { %2097 = vsyncadd (%p2545_p13), %s196_s23, 4294966272  ;;  %p2546_p3 = scmp.eq.s32.totalorder %s2169_s19, 0 }
  0x4f   : > { %2099 = dma.done.wait (%p2546_p3), [#allocation6], 26624   ;;  %p2547_p7 = pmov %p2546_p3 }
  0x50   : > { %v2124_v0 = vmov 0.0   ;;  %v242_v1 = vld [vmem:[#allocation5 + $0x8] sm:$0xff]  ;;  %v255_v2 = vld [vmem:[#allocation5 + $0x70] sm:$0xff]  ;;  %v244_v3 = vld [vmem:[#allocation5 + $0x18] sm:$0xff]  ;;  %p228_p6 = scmp.lt.s32.totalorder %s2169_s19, 1 }
  0x51   : > { %2101 = vsyncadd (%p2547_p7), [#allocation6], 4294940672  ;;  %513 = vmatprep.mubr.f32.mxu0 %v2124_v0  ;;  %626 = vmatprep.mubr.f32.mxu1 %v2124_v0  ;;  %v1724_v4 = vpack.c.bf16 %v255_v2, %v242_v1  ;;  %v257_v5 = vld [vmem:[#allocation5 + $0x80] sm:$0xff]  ;;  %v254_v7 = vld [vmem:[#allocation5 + $0x68] sm:$0xff] }
  0x52   : > { %v241_v6 = vld [vmem:[#allocation5] sm:$0xff]  ;;  %v1756_v8 = vpack.c.bf16 %v257_v5, %v244_v3  ;;  %v243_v10 = vld [vmem:[#allocation5 + $0x10] sm:$0xff]  ;;  %v256_v11 = vld [vmem:[#allocation5 + $0x78] sm:$0xff]  ;;  %s2553_s19 = smov (!%p228_p6, %s2169_s19), 1 }
  0x53   : > { %v1726_v9 = vpack.c.bf16 %v254_v7, %v241_v6  ;;  %v268_v12 = vld [vmem:[#allocation5 + $0xd8] sm:$0xff]  ;;  %1725 = vmatprep.subr.bf16.mxu0 %v1724_v4  ;;  %v1758_v13 = vpack.c.bf16 %v256_v11, %v243_v10  ;;  %v281_v14 = vld [vmem:[#allocation5 + $0x140] sm:$0xff]  ;;  %v270_v15 = vld [vmem:[#allocation5 + $0xe8] sm:$0xff]  ;;  %s1964_s5 = smul.u32 320, %s2553_s19 }
  0x54   : > { %v283_v16 = vld [vmem:[#allocation5 + $0x150] sm:$0xff]  ;;  %1757 = vmatprep.subr.bf16.mxu1 %v1756_v8  ;;  %v1728_v17 = vpack.c.bf16 %v281_v14, %v268_v12  ;;  %v280_v20 = vld [vmem:[#allocation5 + $0x138] sm:$0xff]  ;;  %v269_v21 = vld [vmem:[#allocation5 + $0xe0] sm:$0xff] }
  0x55   : > { %1727 = vmatpush1.bf16.msra.mxu0 %v1726_v9  ;;  %v1760_v18 = vpack.c.bf16 %v283_v16, %v270_v15  ;;  %v267_v19 = vld [vmem:[#allocation5 + $0xd0] sm:$0xff]  ;;  %1759 = vmatpush1.bf16.msra.mxu1 %v1758_v13  ;;  %v282_v23 = vld [vmem:[#allocation5 + $0x148] sm:$0xff]  ;;  %v296_v28 = vld [vmem:[#allocation5 + $0x1b8] sm:$0xff]  ;;  %s2433_s18 = scalar_lea.vmem %s2536_s4, %s1964_s5 }
  0x56   : > { %v1730_v22 = vpack.c.bf16 %v280_v20, %v267_v19  ;;  %v294_v24 = vld [vmem:[#allocation5 + $0x1a8] sm:$0xff]  ;;  %v307_v25 = vld [vmem:[#allocation5 + $0x210] sm:$0xff]  ;;  %1729 = vmatprep.subr.bf16.mxu0 %v1728_v17  ;;  %v1762_v26 = vpack.c.bf16 %v282_v23, %v269_v21  ;;  %v309_v29 = vld [vmem:[#allocation5 + $0x220] sm:$0xff] }
  0x57   : > { %1761 = vmatprep.subr.bf16.mxu1 %v1760_v18  ;;  %v1732_v27 = vpack.c.bf16 %v307_v25, %v294_v24  ;;  %v293_v30 = vld [vmem:[#allocation5 + $0x1a0] sm:$0xff]  ;;  %v1764_v31 = vpack.c.bf16 %v309_v29, %v296_v28  ;;  %v306_v32 = vld [vmem:[#allocation5 + $0x208] sm:$0xff]  ;;  %v295_v33 = vld [vmem:[#allocation5 + $0x1b0] sm:$0xff] }
  0x58   : > { %v308_v34 = vld [vmem:[#allocation5 + $0x218] sm:$0xff]  ;;  %v1734_v35 = vpack.c.bf16 %v306_v32, %v293_v30  ;;  %v333_v37 = vld [vmem:[#allocation5 + $0x2e0] sm:$0xff]  ;;  %v322_v38 = vld [vmem:[#allocation5 + $0x288] sm:$0xff] }
  0x59   : > { %1731 = vmatpush1.bf16.msra.mxu0 %v1730_v22  ;;  %v320_v36 = vld [vmem:[#allocation5 + $0x278] sm:$0xff]  ;;  %1763 = vmatpush1.bf16.msra.mxu1 %v1762_v26  ;;  %v1766_v39 = vpack.c.bf16 %v308_v34, %v295_v33  ;;  %v335_v41 = vld [vmem:[#allocation5 + $0x2f0] sm:$0xff]  ;;  %v321_v45 = vld [vmem:[#allocation5 + $0x280] sm:$0xff] }
  0x5a   : > { %1733 = vmatprep.subr.bf16.mxu0 %v1732_v27  ;;  %v1736_v40 = vpack.c.bf16 %v333_v37, %v320_v36  ;;  %v319_v42 = vld [vmem:[#allocation5 + $0x270] sm:$0xff]  ;;  %v332_v43 = vld [vmem:[#allocation5 + $0x2d8] sm:$0xff]  ;;  %1765 = vmatprep.subr.bf16.mxu1 %v1764_v31  ;;  %v1768_v44 = vpack.c.bf16 %v335_v41, %v322_v38  ;;  %v334_v46 = vld [vmem:[#allocation5 + $0x2e8] sm:$0xff] }
  0x5b   : > { %v346_v47 = vld [vmem:[#allocation5 + $0x348] sm:$0xff]  ;;  %v359_v48 = vld [vmem:[#allocation5 + $0x3b0] sm:$0xff]  ;;  %v348_v49 = vld [vmem:[#allocation5 + $0x358] sm:$0xff]  ;;  %v1738_v51 = vpack.c.bf16 %v332_v43, %v319_v42  ;;  %v1770_v52 = vpack.c.bf16 %v334_v46, %v321_v45 }
  0x5c   : > { %v361_v50 = vld [vmem:[#allocation5 + $0x3c0] sm:$0xff]  ;;  %v1740_v53 = vpack.c.bf16 %v359_v48, %v346_v47  ;;  %v358_v55 = vld [vmem:[#allocation5 + $0x3a8] sm:$0xff]  ;;  %v347_v56 = vld [vmem:[#allocation5 + $0x350] sm:$0xff] }
  0x5d   : > { %1735 = vmatpush1.bf16.msra.mxu0 %v1734_v35  ;;  %1767 = vmatpush1.bf16.msra.mxu1 %v1766_v39  ;;  %v345_v54 = vld [vmem:[#allocation5 + $0x340] sm:$0xff]  ;;  %v1772_v57 = vpack.c.bf16 %v361_v50, %v348_v49  ;;  %v360_v58 = vld [vmem:[#allocation5 + $0x3b8] sm:$0xff]  ;;  %v374_v61 = vld [vmem:[#allocation5 + $0x428] sm:$0xff] }
  0x5e   : > { %1737 = vmatprep.subr.bf16.mxu0 %v1736_v40  ;;  %1769 = vmatprep.subr.bf16.mxu1 %v1768_v44  ;;  %v372_v59 = vld [vmem:[#allocation5 + $0x418] sm:$0xff]  ;;  %v385_v60 = vld [vmem:[#allocation5 + $0x480] sm:$0xff]  ;;  %v387_v62 = vld [vmem:[#allocation5 + $0x490] sm:$0xff]  ;;  %v1742_v63 = vpack.c.bf16 %v358_v55, %v345_v54  ;;  %v1774_v1 = vpack.c.bf16 %v360_v58, %v347_v56 }
  0x5f   : > { %v1744_v2 = vpack.c.bf16 %v385_v60, %v372_v59  ;;  %v371_v3 = vld [vmem:[#allocation5 + $0x410] sm:$0xff]  ;;  %v384_v4 = vld [vmem:[#allocation5 + $0x478] sm:$0xff]  ;;  %v373_v5 = vld [vmem:[#allocation5 + $0x420] sm:$0xff]  ;;  %v1776_v6 = vpack.c.bf16 %v387_v62, %v374_v61 }
  0x60   : > { %v386_v7 = vld [vmem:[#allocation5 + $0x488] sm:$0xff]  ;;  %v411_v9 = vld [vmem:[#allocation5 + $0x550] sm:$0xff]  ;;  %v400_v10 = vld [vmem:[#allocation5 + $0x4f8] sm:$0xff]  ;;  %v1746_v12 = vpack.c.bf16 %v384_v4, %v371_v3 }
  0x61   : > { %1739 = vmatpush1.bf16.msra.mxu0 %v1738_v51  ;;  %1771 = vmatpush1.bf16.msra.mxu1 %v1770_v52  ;;  %v398_v8 = vld [vmem:[#allocation5 + $0x4e8] sm:$0xff]  ;;  %v413_v11 = vld [vmem:[#allocation5 + $0x560] sm:$0xff]  ;;  %v1778_v13 = vpack.c.bf16 %v386_v7, %v373_v5  ;;  %v399_v17 = vld [vmem:[#allocation5 + $0x4f0] sm:$0xff] }
  0x62   : > { %1741 = vmatprep.subr.bf16.mxu0 %v1740_v53  ;;  %1773 = vmatprep.subr.bf16.mxu1 %v1772_v57  ;;  %v1748_v14 = vpack.c.bf16 %v411_v9, %v398_v8  ;;  %v397_v15 = vld [vmem:[#allocation5 + $0x4e0] sm:$0xff]  ;;  %v410_v16 = vld [vmem:[#allocation5 + $0x548] sm:$0xff]  ;;  %v1780_v18 = vpack.c.bf16 %v413_v11, %v400_v10  ;;  %v412_v19 = vld [vmem:[#allocation5 + $0x558] sm:$0xff] }
  0x63   : > { %v424_v20 = vld [vmem:[#allocation5 + $0x5b8] sm:$0xff]  ;;  %v437_v21 = vld [vmem:[#allocation5 + $0x620] sm:$0xff]  ;;  %v426_v22 = vld [vmem:[#allocation5 + $0x5c8] sm:$0xff]  ;;  %v1750_v24 = vpack.c.bf16 %v410_v16, %v397_v15  ;;  %v1782_v25 = vpack.c.bf16 %v412_v19, %v399_v17 }
  0x64   : > { %v439_v23 = vld [vmem:[#allocation5 + $0x630] sm:$0xff]  ;;  %v1752_v26 = vpack.c.bf16 %v437_v21, %v424_v20  ;;  %v436_v28 = vld [vmem:[#allocation5 + $0x618] sm:$0xff]  ;;  %v425_v29 = vld [vmem:[#allocation5 + $0x5c0] sm:$0xff] }
  0x65   : > { %1743 = vmatpush1.bf16.msra.mxu0 %v1742_v63  ;;  %1775 = vmatpush1.bf16.msra.mxu1 %v1774_v1  ;;  %v423_v27 = vld [vmem:[#allocation5 + $0x5b0] sm:$0xff]  ;;  %v1784_v30 = vpack.c.bf16 %v439_v23, %v426_v22  ;;  %v438_v31 = vld [vmem:[#allocation5 + $0x628] sm:$0xff]  ;;  %v248_v34 = vld [vmem:[#allocation5 + $0x38] sm:$0xff] }
  0x66   : > { %1745 = vmatprep.subr.bf16.mxu0 %v1744_v2  ;;  %1777 = vmatprep.subr.bf16.mxu1 %v1776_v6  ;;  %v246_v32 = vld [vmem:[#allocation5 + $0x28] sm:$0xff]  ;;  %v259_v33 = vld [vmem:[#allocation5 + $0x90] sm:$0xff]  ;;  %v261_v35 = vld [vmem:[#allocation5 + $0xa0] sm:$0xff]  ;;  %v1754_v36 = vpack.c.bf16 %v436_v28, %v423_v27  ;;  %v1786_v37 = vpack.c.bf16 %v438_v31, %v425_v29 }
  0x67   : > { %v1788_v38 = vpack.c.bf16 %v259_v33, %v246_v32  ;;  %v245_v39 = vld [vmem:[#allocation5 + $0x20] sm:$0xff]  ;;  %v258_v40 = vld [vmem:[#allocation5 + $0x88] sm:$0xff]  ;;  %v1820_v41 = vpack.c.bf16 %v261_v35, %v248_v34  ;;  %v247_v42 = vld [vmem:[#allocation5 + $0x30] sm:$0xff] }
  0x68   : > { %v260_v43 = vld [vmem:[#allocation5 + $0x98] sm:$0xff]  ;;  %v285_v45 = vld [vmem:[#allocation5 + $0x160] sm:$0xff]  ;;  %v1790_v47 = vpack.c.bf16 %v258_v40, %v245_v39  ;;  %v274_v48 = vld [vmem:[#allocation5 + $0x108] sm:$0xff] }
  0x69   : > { %1747 = vmatpush1.bf16.msra.mxu0 %v1746_v12  ;;  %1779 = vmatpush1.bf16.msra.mxu1 %v1778_v13  ;;  %v272_v44 = vld [vmem:[#allocation5 + $0xf8] sm:$0xff]  ;;  %v2279_v46 = vld [vmem:[%s2266_s27] sm:$0xff]  ;;  %v287_v49 = vld [vmem:[#allocation5 + $0x170] sm:$0xff]  ;;  %v1822_v50 = vpack.c.bf16 %v260_v43, %v247_v42 }
  0x6a   : > { %1749 = vmatprep.subr.bf16.mxu0 %v1748_v14  ;;  %1781 = vmatprep.subr.bf16.mxu1 %v1780_v18  ;;  %v271_v51 = vld [vmem:[#allocation5 + $0xf0] sm:$0xff]  ;;  %v284_v52 = vld [vmem:[#allocation5 + $0x158] sm:$0xff]  ;;  %v1792_v53 = vpack.c.bf16 %v285_v45, %v272_v44  ;;  %v273_v54 = vld [vmem:[#allocation5 + $0x100] sm:$0xff]  ;;  %v1824_v56 = vpack.c.bf16 %v287_v49, %v274_v48 }
  0x6b   : > { %v286_v55 = vld [vmem:[#allocation5 + $0x168] sm:$0xff]  ;;  %v311_v58 = vld [vmem:[#allocation5 + $0x230] sm:$0xff]  ;;  %v1794_v60 = vpack.c.bf16 %v284_v52, %v271_v51  ;;  %v300_v61 = vld [vmem:[#allocation5 + $0x1d8] sm:$0xff] }
  0x6c   : > { %v298_v57 = vld [vmem:[#allocation5 + $0x1c8] sm:$0xff]  ;;  %v313_v62 = vld [vmem:[#allocation5 + $0x240] sm:$0xff]  ;;  %v1826_v63 = vpack.c.bf16 %v286_v55, %v273_v54  ;;  %v299_v4 = vld [vmem:[#allocation5 + $0x1d0] sm:$0xff] }
  0x6d   : > { %1751 = vmatpush1.bf16.msra.mxu0 %v1750_v24  ;;  %1783 = vmatpush1.bf16.msra.mxu1 %v1782_v25  ;;  %v2284_v59 = vld [vmem:[%s2266_s27 + $0x8] sm:$0xff]  ;;  %v297_v1 = vld [vmem:[#allocation5 + $0x1c0] sm:$0xff]  ;;  %v1796_v3 = vpack.c.bf16 %v311_v58, %v298_v57  ;;  %v312_v5 = vld [vmem:[#allocation5 + $0x238] sm:$0xff]  ;;  %v1828_v6 = vpack.c.bf16 %v313_v62, %v300_v61 }
  0x6e   : > { %1753 = vmatprep.subr.bf16.mxu0 %v1752_v26  ;;  %1785 = vmatprep.subr.bf16.mxu1 %v1784_v30  ;;  %v310_v2 = vld [vmem:[#allocation5 + $0x228] sm:$0xff]  ;;  %v324_v7 = vld [vmem:[#allocation5 + $0x298] sm:$0xff]  ;;  %v337_v8 = vld [vmem:[#allocation5 + $0x300] sm:$0xff]  ;;  %v1830_v13 = vpack.c.bf16 %v312_v5, %v299_v4 }
  0x6f   : > { %v2291_v9 = vld [vmem:[%s2266_s27 + $0x10] sm:$0xff]  ;;  %v1798_v10 = vpack.c.bf16 %v310_v2, %v297_v1  ;;  %v326_v11 = vld [vmem:[#allocation5 + $0x2a8] sm:$0xff]  ;;  %v336_v15 = vld [vmem:[#allocation5 + $0x2f8] sm:$0xff]  ;;  %v1800_v16 = vpack.c.bf16 %v337_v8, %v324_v7 }
  0x70   : > { %v339_v12 = vld [vmem:[#allocation5 + $0x310] sm:$0xff]  ;;  %v325_v17 = vld [vmem:[#allocation5 + $0x2a0] sm:$0xff]  ;;  %v338_v18 = vld [vmem:[#allocation5 + $0x308] sm:$0xff] }
  0x71   : > { %1755 = vmatpush1.bf16.msra.mxu0 %v1754_v36  ;;  %1787 = vmatpush1.bf16.msra.mxu1 %v1786_v37  ;;  %v323_v14 = vld [vmem:[#allocation5 + $0x290] sm:$0xff]  ;;  %v1832_v19 = vpack.c.bf16 %v339_v12, %v326_v11  ;;  %v350_v20 = vld [vmem:[#allocation5 + $0x368] sm:$0xff]  ;;  %v2298_v22 = vld [vmem:[%s2266_s27 + $0x18] sm:$0xff]  ;;  %v1834_v26 = vpack.c.bf16 %v338_v18, %v325_v17 }
  0x72   : > { %1789 = vmatprep.subr.bf16.mxu0 %v1788_v38  ;;  %1821 = vmatprep.subr.bf16.mxu1 %v1820_v41  ;;  %v363_v21 = vld [vmem:[#allocation5 + $0x3d0] sm:$0xff]  ;;  %v1802_v23 = vpack.c.bf16 %v336_v15, %v323_v14  ;;  %v352_v24 = vld [vmem:[#allocation5 + $0x378] sm:$0xff]  ;;  %v365_v25 = vld [vmem:[#allocation5 + $0x3e0] sm:$0xff] }
  0x73   : > { %v349_v27 = vld [vmem:[#allocation5 + $0x360] sm:$0xff]  ;;  %v362_v28 = vld [vmem:[#allocation5 + $0x3c8] sm:$0xff]  ;;  %v1804_v29 = vpack.c.bf16 %v363_v21, %v350_v20  ;;  %v351_v30 = vld [vmem:[#allocation5 + $0x370] sm:$0xff]  ;;  %v1836_v32 = vpack.c.bf16 %v365_v25, %v352_v24 }
  0x74   : > { %514 = vmatmul.mubr.f32.vlgmr.msra.gmra.mrb[0].mxu0 %v2279_v46  ;;  %627 = vmatmul.mubr.f32.vlgmr.msra.gmra.mrb[0].mxu1 %v2279_v46  ;;  %v364_v31 = vld [vmem:[#allocation5 + $0x3d8] sm:$0xff]  ;;  %v389_v34 = vld [vmem:[#allocation5 + $0x4a0] sm:$0xff]  ;;  %v1806_v36 = vpack.c.bf16 %v362_v28, %v349_v27  ;;  %v378_v37 = vld [vmem:[#allocation5 + $0x448] sm:$0xff] }
  0x75   : > { %1791 = vmatpush1.bf16.msra.mxu0 %v1790_v47  ;;  %1823 = vmatpush1.bf16.msra.mxu1 %v1822_v50  ;;  %v376_v33 = vld [vmem:[#allocation5 + $0x438] sm:$0xff]  ;;  %v2305_v35 = vld [vmem:[%s2266_s27 + $0x20] sm:$0xff]  ;;  %v391_v38 = vld [vmem:[#allocation5 + $0x4b0] sm:$0xff]  ;;  %v1838_v39 = vpack.c.bf16 %v364_v31, %v351_v30 }
  0x76   : > { %519 = vmatprep.mubr.f32.mxu0 %v2124_v0  ;;  %632 = vmatprep.mubr.f32.mxu1 %v2124_v0  ;;  %v375_v40 = vld [vmem:[#allocation5 + $0x430] sm:$0xff]  ;;  %v388_v41 = vld [vmem:[#allocation5 + $0x498] sm:$0xff]  ;;  %v1808_v42 = vpack.c.bf16 %v389_v34, %v376_v33  ;;  %v377_v43 = vld [vmem:[#allocation5 + $0x440] sm:$0xff]  ;;  %v1840_v45 = vpack.c.bf16 %v391_v38, %v378_v37 }
  0x77   : > { %1793 = vmatprep.subr.bf16.mxu0 %v1792_v53  ;;  %1825 = vmatprep.subr.bf16.mxu1 %v1824_v56  ;;  %v390_v44 = vld [vmem:[#allocation5 + $0x4a8] sm:$0xff]  ;;  %v415_v48 = vld [vmem:[#allocation5 + $0x570] sm:$0xff]  ;;  %v1810_v50 = vpack.c.bf16 %v388_v41, %v375_v40  ;;  %v404_v51 = vld [vmem:[#allocation5 + $0x518] sm:$0xff] }
  0x78   : > { %520 = vmatmul.mubr.f32.gmra.mrb[2].mxu0 %v2284_v59  ;;  %633 = vmatmul.mubr.f32.gmra.mrb[2].mxu1 %v2284_v59  ;;  %v402_v47 = vld [vmem:[#allocation5 + $0x508] sm:$0xff]  ;;  %v417_v52 = vld [vmem:[#allocation5 + $0x580] sm:$0xff]  ;;  %v1842_v53 = vpack.c.bf16 %v390_v44, %v377_v43  ;;  %v403_v57 = vld [vmem:[#allocation5 + $0x510] sm:$0xff] }
  0x79   : > { %1795 = vmatpush1.bf16.msra.mxu0 %v1794_v60  ;;  %1827 = vmatpush1.bf16.msra.mxu1 %v1826_v63  ;;  %v2312_v49 = vld [vmem:[%s2266_s27 + $0x28] sm:$0xff]  ;;  %v401_v54 = vld [vmem:[#allocation5 + $0x500] sm:$0xff]  ;;  %v1812_v56 = vpack.c.bf16 %v415_v48, %v402_v47  ;;  %v416_v58 = vld [vmem:[#allocation5 + $0x578] sm:$0xff]  ;;  %v1844_v60 = vpack.c.bf16 %v417_v52, %v404_v51 }
  0x7a   : > { %525 = vmatprep.mubr.f32.mxu0 %v2124_v0  ;;  %638 = vmatprep.mubr.f32.mxu1 %v2124_v0  ;;  %v414_v55 = vld [vmem:[#allocation5 + $0x568] sm:$0xff]  ;;  %v428_v61 = vld [vmem:[#allocation5 + $0x5d8] sm:$0xff]  ;;  %v441_v62 = vld [vmem:[#allocation5 + $0x640] sm:$0xff]  ;;  %v1846_v4 = vpack.c.bf16 %v416_v58, %v403_v57 }
  0x7b   : > { %1797 = vmatprep.subr.bf16.mxu0 %v1796_v3  ;;  %1829 = vmatprep.subr.bf16.mxu1 %v1828_v6  ;;  %v2319_v63 = vld [vmem:[%s2266_s27 + $0x30] sm:$0xff]  ;;  %v1814_v1 = vpack.c.bf16 %v414_v55, %v401_v54  ;;  %v430_v2 = vld [vmem:[#allocation5 + $0x5e8] sm:$0xff]  ;;  %v440_v6 = vld [vmem:[#allocation5 + $0x638] sm:$0xff]  ;;  %v1816_v7 = vpack.c.bf16 %v441_v62, %v428_v61 }
  0x7c   : > { %526 = vmatmul.mubr.f32.gmra.mrb[4].mxu0 %v2291_v9  ;;  %639 = vmatmul.mubr.f32.gmra.mrb[4].mxu1 %v2291_v9  ;;  %v443_v3 = vld [vmem:[#allocation5 + $0x650] sm:$0xff]  ;;  %v429_v8 = vld [vmem:[#allocation5 + $0x5e0] sm:$0xff]  ;;  %v250_v12 = vld [vmem:[#allocation5 + $0x48] sm:$0xff] }
  0x7d   : > { %1799 = vmatpush1.bf16.msra.mxu0 %v1798_v10  ;;  %1831 = vmatpush1.bf16.msra.mxu1 %v1830_v13  ;;  %v427_v5 = vld [vmem:[#allocation5 + $0x5d0] sm:$0xff]  ;;  %v442_v10 = vld [vmem:[#allocation5 + $0x648] sm:$0xff]  ;;  %v1848_v11 = vpack.c.bf16 %v443_v3, %v430_v2  ;;  %v2326_v14 = vld [vmem:[%s2266_s27 + $0x38] sm:$0xff] }
  0x7e   : > { %531 = vmatprep.mubr.f32.mxu0 %v2124_v0  ;;  %644 = vmatprep.mubr.f32.mxu1 %v2124_v0  ;;  %v263_v13 = vld [vmem:[#allocation5 + $0xb0] sm:$0xff]  ;;  %v1818_v15 = vpack.c.bf16 %v440_v6, %v427_v5  ;;  %v265_v17 = vld [vmem:[#allocation5 + $0xc0] sm:$0xff]  ;;  %v1850_v18 = vpack.c.bf16 %v442_v10, %v429_v8  ;;  %v262_v20 = vld [vmem:[#allocation5 + $0xa8] sm:$0xff] }
  0x7f   : > { %1801 = vmatprep.subr.bf16.mxu0 %v1800_v16  ;;  %1833 = vmatprep.subr.bf16.mxu1 %v1832_v19  ;;  %v252_v16 = vld [vmem:[#allocation5 + $0x58] sm:$0xff]  ;;  %v249_v19 = vld [vmem:[#allocation5 + $0x40] sm:$0xff]  ;;  %v1852_v21 = vpack.c.bf16 %v263_v13, %v250_v12  ;;  %v291_v30 = vld [vmem:[#allocation5 + $0x190] sm:$0xff] }
  0x80   : > { %532 = vmatmul.mubr.f32.gmra.mrb[6].mxu0 %v2298_v22  ;;  %645 = vmatmul.mubr.f32.gmra.mrb[6].mxu1 %v2298_v22  ;;  %v264_v24 = vld [vmem:[#allocation5 + $0xb8] sm:$0xff]  ;;  %v1884_v25 = vpack.c.bf16 %v265_v17, %v252_v16  ;;  %v289_v27 = vld [vmem:[#allocation5 + $0x180] sm:$0xff]  ;;  %v1854_v28 = vpack.c.bf16 %v262_v20, %v249_v19  ;;  %v290_v37 = vld [vmem:[#allocation5 + $0x188] sm:$0xff] }
  0x81   : > { %1803 = vmatpush1.bf16.msra.mxu0 %v1802_v23  ;;  %1835 = vmatpush1.bf16.msra.mxu1 %v1834_v26  ;;  %v251_v23 = vld [vmem:[#allocation5 + $0x50] sm:$0xff]  ;;  %v276_v26 = vld [vmem:[#allocation5 + $0x118] sm:$0xff]  ;;  %v317_v43 = vld [vmem:[#allocation5 + $0x260] sm:$0xff] }
  0x82   : > { %537 = vmatprep.mubr.f32.mxu0 %v2124_v0  ;;  %650 = vmatprep.mubr.f32.mxu1 %v2124_v0  ;;  %v1886_v31 = vpack.c.bf16 %v264_v24, %v251_v23  ;;  %v288_v33 = vld [vmem:[#allocation5 + $0x178] sm:$0xff]  ;;  %v1856_v34 = vpack.c.bf16 %v289_v27, %v276_v26  ;;  %v315_v40 = vld [vmem:[#allocation5 + $0x250] sm:$0xff]  ;;  %v314_v47 = vld [vmem:[#allocation5 + $0x248] sm:$0xff] }
  0x83   : > { %1805 = vmatprep.subr.bf16.mxu0 %v1804_v29  ;;  %1837 = vmatprep.subr.bf16.mxu1 %v1836_v32  ;;  %v278_v29 = vld [vmem:[#allocation5 + $0x128] sm:$0xff]  ;;  %v275_v32 = vld [vmem:[#allocation5 + $0x110] sm:$0xff]  ;;  %v316_v51 = vld [vmem:[#allocation5 + $0x258] sm:$0xff] }
  0x84   : > { %538 = vmatmul.mubr.f32.gmra.mrb[8].mxu0 %v2305_v35  ;;  %651 = vmatmul.mubr.f32.gmra.mrb[8].mxu1 %v2305_v35  ;;  %v1888_v38 = vpack.c.bf16 %v291_v30, %v278_v29  ;;  %v1858_v41 = vpack.c.bf16 %v288_v33, %v275_v32  ;;  %v341_v54 = vld [vmem:[#allocation5 + $0x320] sm:$0xff]  ;;  %v343_v57 = vld [vmem:[#allocation5 + $0x330] sm:$0xff]  ;;  %v340_v61 = vld [vmem:[#allocation5 + $0x318] sm:$0xff] }
  0x85   : > { %1807 = vmatpush1.bf16.msra.mxu0 %v1806_v36  ;;  %1839 = vmatpush1.bf16.msra.mxu1 %v1838_v39  ;;  %v277_v36 = vld [vmem:[#allocation5 + $0x120] sm:$0xff]  ;;  %v302_v39 = vld [vmem:[#allocation5 + $0x1e8] sm:$0xff]  ;;  %v367_v5 = vld [vmem:[#allocation5 + $0x3f0] sm:$0xff] }
  0x86   : > { %543 = vmatprep.mubr.f32.mxu0 %v2124_v0  ;;  %656 = vmatprep.mubr.f32.mxu1 %v2124_v0  ;;  %v1890_v44 = vpack.c.bf16 %v290_v37, %v277_v36  ;;  %v1860_v48 = vpack.c.bf16 %v315_v40, %v302_v39  ;;  %v342_v2 = vld [vmem:[#allocation5 + $0x328] sm:$0xff]  ;;  %v369_v8 = vld [vmem:[#allocation5 + $0x400] sm:$0xff]  ;;  %v368_v16 = vld [vmem:[#allocation5 + $0x3f8] sm:$0xff] }
  0x87   : > { %1809 = vmatprep.subr.bf16.mxu0 %v1808_v42  ;;  %1841 = vmatprep.subr.bf16.mxu1 %v1840_v45  ;;  %v304_v42 = vld [vmem:[#allocation5 + $0x1f8] sm:$0xff]  ;;  %v301_v45 = vld [vmem:[#allocation5 + $0x1e0] sm:$0xff]  ;;  %v366_v12 = vld [vmem:[#allocation5 + $0x3e8] sm:$0xff] }
  0x88   : > { %544 = vmatmul.mubr.f32.gmra.mrb[10].mxu0 %v2312_v49  ;;  %657 = vmatmul.mubr.f32.gmra.mrb[10].mxu1 %v2312_v49  ;;  %v1892_v52 = vpack.c.bf16 %v317_v43, %v304_v42  ;;  %v1862_v55 = vpack.c.bf16 %v314_v47, %v301_v45  ;;  %v393_v19 = vld [vmem:[#allocation5 + $0x4c0] sm:$0xff]  ;;  %v395_v23 = vld [vmem:[#allocation5 + $0x4d0] sm:$0xff]  ;;  %v392_v26 = vld [vmem:[#allocation5 + $0x4b8] sm:$0xff] }
  0x89   : > { %1811 = vmatpush1.bf16.msra.mxu0 %v1810_v50  ;;  %1843 = vmatpush1.bf16.msra.mxu1 %v1842_v53  ;;  %v303_v50 = vld [vmem:[#allocation5 + $0x1f0] sm:$0xff]  ;;  %v328_v53 = vld [vmem:[#allocation5 + $0x2b8] sm:$0xff]  ;;  %v394_v29 = vld [vmem:[#allocation5 + $0x4c8] sm:$0xff] }
  0x8a   : > { %549 = vmatprep.mubr.f32.mxu0 %v2124_v0  ;;  %662 = vmatprep.mubr.f32.mxu1 %v2124_v0  ;;  %v1894_v58 = vpack.c.bf16 %v316_v51, %v303_v50  ;;  %v1864_v62 = vpack.c.bf16 %v341_v54, %v328_v53  ;;  %v419_v32 = vld [vmem:[#allocation5 + $0x590] sm:$0xff]  ;;  %v421_v36 = vld [vmem:[#allocation5 + $0x5a0] sm:$0xff]  ;;  %v418_v39 = vld [vmem:[#allocation5 + $0x588] sm:$0xff] }
  0x8b   : > { %1813 = vmatprep.subr.bf16.mxu0 %v1812_v56  ;;  %1845 = vmatprep.subr.bf16.mxu1 %v1844_v60  ;;  %v330_v56 = vld [vmem:[#allocation5 + $0x2c8] sm:$0xff]  ;;  %v327_v60 = vld [vmem:[#allocation5 + $0x2b0] sm:$0xff]  ;;  %v420_v42 = vld [vmem:[#allocation5 + $0x598] sm:$0xff] }
  0x8c   : > { %550 = vmatmul.mubr.f32.gmra.mrb[12].mxu0 %v2319_v63  ;;  %663 = vmatmul.mubr.f32.gmra.mrb[12].mxu1 %v2319_v63  ;;  %v1896_v3 = vpack.c.bf16 %v343_v57, %v330_v56  ;;  %v1866_v6 = vpack.c.bf16 %v340_v61, %v327_v60  ;;  %v445_v45 = vld [vmem:[#allocation5 + $0x660] sm:$0xff]  ;;  %v447_v50 = vld [vmem:[#allocation5 + $0x670] sm:$0xff]  ;;  %v444_v53 = vld [vmem:[#allocation5 + $0x658] sm:$0xff] }
  0x8d   : > { %1815 = vmatpush1.bf16.msra.mxu0 %v1814_v1  ;;  %1847 = vmatpush1.bf16.msra.mxu1 %v1846_v4  ;;  %v329_v1 = vld [vmem:[#allocation5 + $0x2c0] sm:$0xff]  ;;  %v354_v4 = vld [vmem:[#allocation5 + $0x388] sm:$0xff] }
  0x8e   : > { %555 = vmatprep.mubr.f32.mxu0 %v2124_v0  ;;  %668 = vmatprep.mubr.f32.mxu1 %v2124_v0  ;;  %v1898_v10 = vpack.c.bf16 %v342_v2, %v329_v1  ;;  %v1868_v13 = vpack.c.bf16 %v367_v5, %v354_v4  ;;  %v446_v56 = vld [vmem:[#allocation5 + $0x668] sm:$0xff]  ;;  %v279_v2 = vld [vmem:[#allocation5 + $0x130] sm:$0xff]  ;;  %v305_v5 = vld [vmem:[#allocation5 + $0x200] sm:$0xff] }
  0x8f   : > { %1817 = vmatprep.subr.bf16.mxu0 %v1816_v7  ;;  %1849 = vmatprep.subr.bf16.mxu1 %v1848_v11  ;;  %v356_v7 = vld [vmem:[#allocation5 + $0x398] sm:$0xff]  ;;  %v353_v11 = vld [vmem:[#allocation5 + $0x380] sm:$0xff]  ;;  %v266_v60 = vld [vmem:[#allocation5 + $0xc8] sm:$0xff] }
  0x90   : > { %556 = vmatmul.mubr.f32.gmra.mrb[14].mxu0 %v2326_v14  ;;  %669 = vmatmul.mubr.f32.gmra.mrb[14].mxu1 %v2326_v14  ;;  %v1900_v17 = vpack.c.bf16 %v369_v8, %v356_v7  ;;  %v1870_v20 = vpack.c.bf16 %v366_v12, %v353_v11  ;;  %v331_v8 = vld [vmem:[#allocation5 + $0x2d0] sm:$0xff]  ;;  %v357_v12 = vld [vmem:[#allocation5 + $0x3a0] sm:$0xff] }
  0x91   : > { %1819 = vmatpush1.bf16.msra.mxu0 %v1818_v15  ;;  %1851 = vmatpush1.bf16.msra.mxu1 %v1850_v18  ;;  %v355_v15 = vld [vmem:[#allocation5 + $0x390] sm:$0xff]  ;;  %v380_v18 = vld [vmem:[#allocation5 + $0x458] sm:$0xff] }
  0x92   : > { %739 = vmatprep.mubr.f32.mxu0 %v2124_v0  ;;  %846 = vmatprep.mubr.f32.mxu1 %v2124_v0  ;;  %v1902_v24 = vpack.c.bf16 %v368_v16, %v355_v15  ;;  %v1872_v27 = vpack.c.bf16 %v393_v19, %v380_v18  ;;  %v383_v16 = vld [vmem:[#allocation5 + $0x470] sm:$0xff]  ;;  %v409_v19 = vld [vmem:[#allocation5 + $0x540] sm:$0xff] }
  0x93   : > { %1853 = vmatprep.subr.bf16.mxu0 %v1852_v21  ;;  %1885 = vmatprep.subr.bf16.mxu1 %v1884_v25  ;;  %v382_v21 = vld [vmem:[#allocation5 + $0x468] sm:$0xff]  ;;  %v379_v25 = vld [vmem:[#allocation5 + $0x450] sm:$0xff] }
  0x94   : > { %740 = vmatmul.mubr.f32.vlgmr.msra.gmra.mrb[16].mxu0 %v2279_v46  ;;  %847 = vmatmul.mubr.f32.vlgmr.msra.gmra.mrb[16].mxu1 %v2279_v46  ;;  %v1904_v30 = vpack.c.bf16 %v395_v23, %v382_v21  ;;  %v1874_v33 = vpack.c.bf16 %v392_v26, %v379_v25  ;;  %v435_v23 = vld [vmem:[#allocation5 + $0x610] sm:$0xff] }
  0x95   : > { %1855 = vmatpush1.bf16.msra.mxu0 %v1854_v28  ;;  %1887 = vmatpush1.bf16.msra.mxu1 %v1886_v31  ;;  %v381_v28 = vld [vmem:[#allocation5 + $0x460] sm:$0xff]  ;;  %v406_v31 = vld [vmem:[#allocation5 + $0x528] sm:$0xff] }
  0x96   : > { %745 = vmatprep.mubr.f32.mxu0 %v2124_v0  ;;  %852 = vmatprep.mubr.f32.mxu1 %v2124_v0  ;;  %v1906_v37 = vpack.c.bf16 %v394_v29, %v381_v28  ;;  %v1876_v40 = vpack.c.bf16 %v419_v32, %v406_v31 }
  0x97   : > { %1857 = vmatprep.subr.bf16.mxu0 %v1856_v34  ;;  %1889 = vmatprep.subr.bf16.mxu1 %v1888_v38  ;;  %v408_v34 = vld [vmem:[#allocation5 + $0x538] sm:$0xff]  ;;  %v405_v38 = vld [vmem:[#allocation5 + $0x520] sm:$0xff] }
  0x98   : > { %746 = vmatmul.mubr.f32.gmra.mrb[18].mxu0 %v2284_v59  ;;  %853 = vmatmul.mubr.f32.gmra.mrb[18].mxu1 %v2284_v59  ;;  %v1908_v43 = vpack.c.bf16 %v421_v36, %v408_v34  ;;  %v1878_v47 = vpack.c.bf16 %v418_v39, %v405_v38 }
  0x99   : > { %1859 = vmatpush1.bf16.msra.mxu0 %v1858_v41  ;;  %1891 = vmatpush1.bf16.msra.mxu1 %v1890_v44  ;;  %v407_v41 = vld [vmem:[#allocation5 + $0x530] sm:$0xff]  ;;  %v432_v44 = vld [vmem:[#allocation5 + $0x5f8] sm:$0xff] }
  0x9a   : > { %751 = vmatprep.mubr.f32.mxu0 %v2124_v0  ;;  %858 = vmatprep.mubr.f32.mxu1 %v2124_v0  ;;  %v1910_v51 = vpack.c.bf16 %v420_v42, %v407_v41  ;;  %v1880_v54 = vpack.c.bf16 %v445_v45, %v432_v44 }
  0x9b   : > { %1861 = vmatprep.subr.bf16.mxu0 %v1860_v48  ;;  %1893 = vmatprep.subr.bf16.mxu1 %v1892_v52  ;;  %v434_v48 = vld [vmem:[#allocation5 + $0x608] sm:$0xff]  ;;  %v431_v52 = vld [vmem:[#allocation5 + $0x5f0] sm:$0xff] }
  0x9c   : > { %752 = vmatmul.mubr.f32.gmra.mrb[20].mxu0 %v2291_v9  ;;  %859 = vmatmul.mubr.f32.gmra.mrb[20].mxu1 %v2291_v9  ;;  %v1912_v57 = vpack.c.bf16 %v447_v50, %v434_v48  ;;  %v1882_v61 = vpack.c.bf16 %v444_v53, %v431_v52 }
  0x9d   : > { %1863 = vmatpush1.bf16.msra.mxu0 %v1862_v55  ;;  %1895 = vmatpush1.bf16.msra.mxu1 %v1894_v58  ;;  %v433_v55 = vld [vmem:[#allocation5 + $0x600] sm:$0xff] }
  0x9e   : > { %756 = vmatprep.mubr.f32.mxu0 %v2124_v0  ;;  %862 = vmatprep.mubr.f32.mxu1 %v2124_v0  ;;  %v253_v58 = vld [vmem:[#allocation5 + $0x60] sm:$0xff] }
  0x9f   : > { %1865 = vmatprep.subr.bf16.mxu0 %v1864_v62  ;;  %1897 = vmatprep.subr.bf16.mxu1 %v1896_v3  ;;  %v1914_v62 = vpack.c.bf16 %v446_v56, %v433_v55  ;;  %v1916_v1 = vpack.c.bf16 %v266_v60, %v253_v58  ;;  %v292_v3 = vld [vmem:[#allocation5 + $0x198] sm:$0xff] }
  0xa0   : > { %757 = vmatmul.mubr.f32.gmra.mrb[22].mxu0 %v2298_v22  ;;  %863 = vmatmul.mubr.f32.gmra.mrb[22].mxu1 %v2298_v22  ;;  %v1920_v4 = vpack.c.bf16 %v292_v3, %v279_v2 }
  0xa1   : > { %1867 = vmatpush1.bf16.msra.mxu0 %v1866_v6  ;;  %1899 = vmatpush1.bf16.msra.mxu1 %v1898_v10  ;;  %v318_v6 = vld [vmem:[#allocation5 + $0x268] sm:$0xff]  ;;  %v344_v10 = vld [vmem:[#allocation5 + $0x338] sm:$0xff] }
  0xa2   : > { %761 = vmatprep.mubr.f32.mxu0 %v2124_v0  ;;  %866 = vmatprep.mubr.f32.mxu1 %v2124_v0  ;;  %v1924_v7 = vpack.c.bf16 %v318_v6, %v305_v5  ;;  %v1928_v11 = vpack.c.bf16 %v344_v10, %v331_v8 }
  0xa3   : > { %1869 = vmatprep.subr.bf16.mxu0 %v1868_v13  ;;  %1901 = vmatprep.subr.bf16.mxu1 %v1900_v17  ;;  %v370_v13 = vld [vmem:[#allocation5 + $0x408] sm:$0xff]  ;;  %v396_v17 = vld [vmem:[#allocation5 + $0x4d8] sm:$0xff] }
  0xa4   : > { %762 = vmatmul.mubr.f32.gmra.mrb[24].mxu0 %v2305_v35  ;;  %867 = vmatmul.mubr.f32.gmra.mrb[24].mxu1 %v2305_v35  ;;  %v1932_v15 = vpack.c.bf16 %v370_v13, %v357_v12  ;;  %v1936_v18 = vpack.c.bf16 %v396_v17, %v383_v16 }
  0xa5   : > { %1871 = vmatpush1.bf16.msra.mxu0 %v1870_v20  ;;  %1903 = vmatpush1.bf16.msra.mxu1 %v1902_v24  ;;  %v422_v20 = vld [vmem:[#allocation5 + $0x5a8] sm:$0xff]  ;;  %v448_v24 = vld [vmem:[#allocation5 + $0x678] sm:$0xff] }
  0xa6   : > { %766 = vmatprep.mubr.f32.mxu0 %v2124_v0  ;;  %870 = vmatprep.mubr.f32.mxu1 %v2124_v0  ;;  %v1940_v21 = vpack.c.bf16 %v422_v20, %v409_v19  ;;  %v1944_v25 = vpack.c.bf16 %v448_v24, %v435_v23 }
  0xa7   : > { %1873 = vmatprep.subr.bf16.mxu0 %v1872_v27  ;;  %1905 = vmatprep.subr.bf16.mxu1 %v1904_v30 }
  0xa8   : > { %767 = vmatmul.mubr.f32.gmra.mrb[26].mxu0 %v2312_v49  ;;  %871 = vmatmul.mubr.f32.gmra.mrb[26].mxu1 %v2312_v49 }
  0xa9   : > { %1875 = vmatpush1.bf16.msra.mxu0 %v1874_v33  ;;  %1907 = vmatpush1.bf16.msra.mxu1 %v1906_v37 }
  0xaa   : > { %771 = vmatprep.mubr.f32.mxu0 %v2124_v0  ;;  %874 = vmatprep.mubr.f32.mxu1 %v2124_v0 }
  0xab   : > { %1877 = vmatprep.subr.bf16.mxu0 %v1876_v40  ;;  %1909 = vmatprep.subr.bf16.mxu1 %v1908_v43 }
  0xac   : > { %772 = vmatmul.mubr.f32.gmra.mrb[28].mxu0 %v2319_v63  ;;  %875 = vmatmul.mubr.f32.gmra.mrb[28].mxu1 %v2319_v63 }
  0xad   : > { %1879 = vmatpush1.bf16.msra.mxu0 %v1878_v47  ;;  %1911 = vmatpush1.bf16.msra.mxu1 %v1910_v51 }
  0xae   : > { %776 = vmatprep.mubr.f32.mxu0 %v2124_v0  ;;  %878 = vmatprep.mubr.f32.mxu1 %v2124_v0 }
  0xaf   : > { %1881 = vmatprep.subr.bf16.mxu0 %v1880_v54  ;;  %1913 = vmatprep.subr.bf16.mxu1 %v1912_v57 }
  0xb0   : > { %777 = vmatmul.mubr.f32.gmra.mrb[30].mxu0 %v2326_v14  ;;  %879 = vmatmul.mubr.f32.gmra.mrb[30].mxu1 %v2326_v14 }
  0xb1   : > { %1883 = vmatpush1.bf16.msra.mxu0 %v1882_v61  ;;  %1915 = vmatpush1.bf16.msra.mxu1 %v1914_v62 }
  0xb2   : > { %947 = vmatprep.mubr.f32.mxu0 %v2124_v0  ;;  %1060 = vmatprep.mubr.f32.mxu1 %v2124_v0 }
  0xb3   : > { %1948 = vmatprep.subr.bf16.mxu1 %v1916_v1  ;;  %1917 = vmatprep.subr.bf16.mxu0 %v1916_v1 }
  0xb4   : > { %948 = vmatmul.mubr.f32.vlgmr.msra.gmra.mrb[32].mxu0 %v2279_v46  ;;  %1061 = vmatmul.mubr.f32.vlgmr.msra.gmra.mrb[32].mxu1 %v2279_v46 }
  0xb5   : > { %953 = vmatprep.mubr.f32.mxu0 %v2124_v0  ;;  %1064 = vmatprep.mubr.f32.mxu1 %v2124_v0 }
  0xb6   : > { %1956 = vmatpush3.bf16.msra.mxu1 %v1916_v1  ;;  %1919 = vmatpush3.bf16.msra.mxu0 %v1916_v1 }
  0xb7   : > { %1949 = vmatprep.subr.bf16.mxu1 %v1920_v4  ;;  %1921 = vmatprep.subr.bf16.mxu0 %v1920_v4 }
  0xb8   : > { %954 = vmatmul.mubr.f32.gmra.mrb[34].mxu0 %v2284_v59  ;;  %1065 = vmatmul.mubr.f32.gmra.mrb[34].mxu1 %v2284_v59 }
  0xb9   : > { %959 = vmatprep.mubr.f32.mxu0 %v2124_v0  ;;  %1068 = vmatprep.mubr.f32.mxu1 %v2124_v0 }
  0xba   : > { %1957 = vmatpush3.bf16.msra.mxu1 %v1920_v4  ;;  %1923 = vmatpush3.bf16.msra.mxu0 %v1920_v4 }
  0xbb   : > { %1950 = vmatprep.subr.bf16.mxu1 %v1924_v7  ;;  %1925 = vmatprep.subr.bf16.mxu0 %v1924_v7 }
  0xbc   : > { %960 = vmatmul.mubr.f32.gmra.mrb[36].mxu0 %v2291_v9  ;;  %1069 = vmatmul.mubr.f32.gmra.mrb[36].mxu1 %v2291_v9 }
  0xbd   : > { %965 = vmatprep.mubr.f32.mxu0 %v2124_v0  ;;  %1072 = vmatprep.mubr.f32.mxu1 %v2124_v0 }
  0xbe   : > { %1958 = vmatpush3.bf16.msra.mxu1 %v1924_v7  ;;  %1927 = vmatpush3.bf16.msra.mxu0 %v1924_v7 }
  0xbf   : > { %1951 = vmatprep.subr.bf16.mxu1 %v1928_v11  ;;  %1929 = vmatprep.subr.bf16.mxu0 %v1928_v11 }
  0xc0   : > { %966 = vmatmul.mubr.f32.gmra.mrb[38].mxu0 %v2298_v22  ;;  %1073 = vmatmul.mubr.f32.gmra.mrb[38].mxu1 %v2298_v22 }
  0xc1   : > { %971 = vmatprep.mubr.f32.mxu0 %v2124_v0  ;;  %1076 = vmatprep.mubr.f32.mxu1 %v2124_v0 }
  0xc2   : > { %1959 = vmatpush3.bf16.msra.mxu1 %v1928_v11  ;;  %1931 = vmatpush3.bf16.msra.mxu0 %v1928_v11 }
  0xc3   : > { %1952 = vmatprep.subr.bf16.mxu1 %v1932_v15  ;;  %1933 = vmatprep.subr.bf16.mxu0 %v1932_v15 }
  0xc4   : > { %972 = vmatmul.mubr.f32.gmra.mrb[40].mxu0 %v2305_v35  ;;  %1077 = vmatmul.mubr.f32.gmra.mrb[40].mxu1 %v2305_v35 }
  0xc5   : > { %977 = vmatprep.mubr.f32.mxu0 %v2124_v0  ;;  %1080 = vmatprep.mubr.f32.mxu1 %v2124_v0 }
  0xc6   : > { %1960 = vmatpush3.bf16.msra.mxu1 %v1932_v15  ;;  %1935 = vmatpush3.bf16.msra.mxu0 %v1932_v15 }
  0xc7   : > { %1953 = vmatprep.subr.bf16.mxu1 %v1936_v18  ;;  %1937 = vmatprep.subr.bf16.mxu0 %v1936_v18 }
  0xc8   : > { %978 = vmatmul.mubr.f32.gmra.mrb[42].mxu0 %v2312_v49  ;;  %1081 = vmatmul.mubr.f32.gmra.mrb[42].mxu1 %v2312_v49 }
  0xc9   : > { %983 = vmatprep.mubr.f32.mxu0 %v2124_v0  ;;  %1084 = vmatprep.mubr.f32.mxu1 %v2124_v0 }
  0xca   : > { %1961 = vmatpush3.bf16.msra.mxu1 %v1936_v18  ;;  %1939 = vmatpush3.bf16.msra.mxu0 %v1936_v18 }
  0xcb   : > { %1954 = vmatprep.subr.bf16.mxu1 %v1940_v21  ;;  %1941 = vmatprep.subr.bf16.mxu0 %v1940_v21 }
  0xcc   : > { %984 = vmatmul.mubr.f32.gmra.mrb[44].mxu0 %v2319_v63  ;;  %1085 = vmatmul.mubr.f32.gmra.mrb[44].mxu1 %v2319_v63 }
  0xcd   : > { %989 = vmatprep.mubr.f32.mxu0 %v2124_v0  ;;  %1090 = vmatprep.mubr.f32.mxu1 %v2124_v0  ;;  %v1214_v0 = vlaneseq }
  0xce   : > { %1962 = vmatpush3.bf16.msra.mxu1 %v1940_v21  ;;  %1943 = vmatpush3.bf16.msra.mxu0 %v1940_v21 }
  0xcf   : > { %1955 = vmatprep.subr.bf16.mxu1 %v1944_v25  ;;  %1945 = vmatprep.subr.bf16.mxu0 %v1944_v25  ;;  %v2404_v26 = vshrl.u32 %v1214_v0, 7 }
  0xd0   : > { %990 = vmatmul.mubr.f32.gmra.mrb[46].mxu0 %v2326_v14  ;;  %1091 = vmatmul.mubr.f32.gmra.mrb[46].mxu1 %v2326_v14 }
  0xd1   : > { %1712 = vmatprep.mubr.f32.mxu0 %v2279_v46  ;;  %1718 = vmatprep.mubr.f32.mxu1 %v2305_v35  ;;  %v1234_v46 = vsub.s32 1, %v2404_v26  ;;  %v1216_v35 = vsub.s32 0, %v2404_v26 }
  0xd2   : > { %1963 = vmatpush3.bf16.msra.mxu1 %v1944_v25  ;;  %1947 = vmatpush3.bf16.msra.mxu0 %v1944_v25 }
  0xd5   : > { %1719 = vmatmul.mubr.f32.vlgmr.msra.gmra.mrb[48].mxu1 %v2312_v49  ;;  %1713 = vmatmul.mubr.f32.vlgmr.msra.gmra.mrb[48].mxu0 %v2284_v59  ;;  %v2412_v49 = vld [vmem:[%s2535_s3] sm:$0xf]  ;;  %v1238_v59 = vsub.s32 2, %v2404_v26 }
  0xd6   : > { %1721 = vmatprep.mubr.f32.mxu1 %v2319_v63  ;;  %1715 = vmatprep.mubr.f32.mxu0 %v2291_v9  ;;  %v2417_v9 = vrot.slane %v2412_v49, %v1234_v46 }
  0xd7   : > { %v2425_v63 = vrot.slane %v2412_v49, %v1238_v59 }
  0xd9   : > { %1722 = vmatmul.mubr.f32.gmra.mrb[50].mxu1 %v2326_v14  ;;  %1716 = vmatmul.mubr.f32.gmra.mrb[50].mxu0 %v2298_v22  ;;  %v2422_v22 = vrot.slane %v2412_v49, %v1216_v35 }
 0x147   : > { %v515_v14 = vpop.f32.mrb[0].mxu0  ;;  %v628_v27 = vpop.f32.mrb[0].mxu1 }
 0x148   : > { %v517_v28 = vpop.f32.mrb[1].mxu0  ;;  %v1249_v29 = vadd.f32 %v2417_v9, %v628_v27  ;;  %v630_v30 = vpop.f32.mrb[1].mxu1 }
 0x149   : > { %v1248_v31 = vadd.f32 %v2422_v22, %v517_v28  ;;  %v1250_v32 = vadd.f32 %v2425_v63, %v630_v30 }
 0x14a   : > { %1281 = vst [vmem:[#allocation2 + $0x8] sm:$0xff] %v1249_v29 }
 0x14b   : > { %v1501_v33 = vmax.f32 %v1248_v31, 0.0  ;;  %v521_v34 = vpop.f32.mrb[2].mxu0  ;;  %v1503_v36 = vmax.f32 %v1250_v32, 0.0  ;;  %v634_v37 = vpop.f32.mrb[2].mxu1  ;;  %v1242_v31 = vsub.s32 3, %v2404_v26 }
 0x14c   : > { %v1196_v38 = vadd.f32 %v521_v34, %v515_v14  ;;  %v523_v39 = vpop.f32.mrb[3].mxu0  ;;  %v1253_v40 = vadd.f32 %v2417_v9, %v634_v37  ;;  %v636_v41 = vpop.f32.mrb[3].mxu1 }
 0x14d   : > { %1533 = vst [vmem:[%s2433_s18 + $0x8] sm:$0xff] %v1501_v33  ;;  %v1252_v42 = vadd.f32 %v2422_v22, %v523_v39  ;;  %1535 = vst [vmem:[%s2433_s18 + $0x18] sm:$0xff] %v1503_v36  ;;  %v1254_v43 = vadd.f32 %v2425_v63, %v636_v41 }
 0x14e   : > { %1285 = vst [vmem:[#allocation2 + $0x28] sm:$0xff] %v1253_v40 }
 0x14f   : > { %v1505_v44 = vmax.f32 %v1252_v42, 0.0  ;;  %v527_v45 = vpop.f32.mrb[4].mxu0  ;;  %v1507_v47 = vmax.f32 %v1254_v43, 0.0  ;;  %v640_v48 = vpop.f32.mrb[4].mxu1  ;;  %v2467_v43 = vrot.slane %v2412_v49, %v1242_v31 }
 0x150   : > { %v1197_v50 = vadd.f32 %v1196_v38, %v527_v45  ;;  %v529_v51 = vpop.f32.mrb[5].mxu0  ;;  %v1257_v52 = vadd.f32 %v2417_v9, %v640_v48  ;;  %v642_v53 = vpop.f32.mrb[5].mxu1 }
 0x151   : > { %1537 = vst [vmem:[%s2433_s18 + $0x30] sm:$0xff] %v1505_v44  ;;  %v1256_v54 = vadd.f32 %v2422_v22, %v529_v51  ;;  %1539 = vst [vmem:[%s2433_s18 + $0x40] sm:$0xff] %v1507_v47  ;;  %v1258_v55 = vadd.f32 %v2425_v63, %v642_v53 }
 0x152   : > { %1289 = vst [vmem:[#allocation2 + $0x48] sm:$0xff] %v1257_v52 }
 0x153   : > { %v1509_v56 = vmax.f32 %v1256_v54, 0.0  ;;  %v533_v57 = vpop.f32.mrb[6].mxu0  ;;  %v1511_v58 = vmax.f32 %v1258_v55, 0.0  ;;  %v646_v60 = vpop.f32.mrb[6].mxu1 }
 0x154   : > { %v1198_v61 = vadd.f32 %v1197_v50, %v533_v57  ;;  %v535_v62 = vpop.f32.mrb[7].mxu0  ;;  %v1261_v1 = vadd.f32 %v2417_v9, %v646_v60  ;;  %v648_v2 = vpop.f32.mrb[7].mxu1 }
 0x155   : > { %1541 = vst [vmem:[%s2433_s18 + $0x58] sm:$0xff] %v1509_v56  ;;  %v1260_v3 = vadd.f32 %v2422_v22, %v535_v62  ;;  %1543 = vst [vmem:[%s2433_s18 + $0x68] sm:$0xff] %v1511_v58  ;;  %v1262_v4 = vadd.f32 %v2425_v63, %v648_v2 }
 0x156   : > { %1293 = vst [vmem:[#allocation2 + $0x68] sm:$0xff] %v1261_v1 }
 0x157   : > { %v1513_v5 = vmax.f32 %v1260_v3, 0.0  ;;  %v539_v6 = vpop.f32.mrb[8].mxu0  ;;  %v1515_v7 = vmax.f32 %v1262_v4, 0.0  ;;  %v652_v8 = vpop.f32.mrb[8].mxu1 }
 0x158   : > { %v1199_v10 = vadd.f32 %v1198_v61, %v539_v6  ;;  %v541_v11 = vpop.f32.mrb[9].mxu0  ;;  %v1265_v12 = vadd.f32 %v2417_v9, %v652_v8  ;;  %v654_v13 = vpop.f32.mrb[9].mxu1 }
 0x159   : > { %1545 = vst [vmem:[%s2433_s18 + $0x80] sm:$0xff] %v1513_v5  ;;  %v1264_v15 = vadd.f32 %v2422_v22, %v541_v11  ;;  %1547 = vst [vmem:[%s2433_s18 + $0x90] sm:$0xff] %v1515_v7  ;;  %v1266_v16 = vadd.f32 %v2425_v63, %v654_v13 }
 0x15a   : > { %1297 = vst [vmem:[#allocation2 + $0x88] sm:$0xff] %v1265_v12 }
 0x15b   : > { %v1517_v17 = vmax.f32 %v1264_v15, 0.0  ;;  %v545_v18 = vpop.f32.mrb[10].mxu0  ;;  %v1519_v19 = vmax.f32 %v1266_v16, 0.0  ;;  %v658_v20 = vpop.f32.mrb[10].mxu1 }
 0x15c   : > { %v1200_v21 = vadd.f32 %v1199_v10, %v545_v18  ;;  %v547_v23 = vpop.f32.mrb[11].mxu0  ;;  %v1269_v24 = vadd.f32 %v2417_v9, %v658_v20  ;;  %v660_v25 = vpop.f32.mrb[11].mxu1 }
 0x15d   : > { %1549 = vst [vmem:[%s2433_s18 + $0xa8] sm:$0xff] %v1517_v17  ;;  %v1268_v0 = vadd.f32 %v2422_v22, %v547_v23  ;;  %1551 = vst [vmem:[%s2433_s18 + $0xb8] sm:$0xff] %v1519_v19  ;;  %v1270_v46 = vadd.f32 %v2425_v63, %v660_v25  ;;  %v1211_v17 = vld [vmem:[%s2534_s2] sm:$0x1] }
 0x15e   : > { %1301 = vst [vmem:[#allocation2 + $0xa8] sm:$0xff] %v1269_v24 }
 0x15f   : > { %v1521_v59 = vmax.f32 %v1268_v0, 0.0  ;;  %v551_v14 = vpop.f32.mrb[12].mxu0  ;;  %v1523_v27 = vmax.f32 %v1270_v46, 0.0  ;;  %v664_v28 = vpop.f32.mrb[12].mxu1 }
 0x160   : > { %v1201_v29 = vadd.f32 %v1200_v21, %v551_v14  ;;  %v553_v30 = vpop.f32.mrb[13].mxu0  ;;  %v1273_v32 = vadd.f32 %v2417_v9, %v664_v28  ;;  %v666_v33 = vpop.f32.mrb[13].mxu1 }
 0x161   : > { %1553 = vst [vmem:[%s2433_s18 + $0xd0] sm:$0xff] %v1521_v59  ;;  %v1272_v34 = vadd.f32 %v2422_v22, %v553_v30  ;;  %1555 = vst [vmem:[%s2433_s18 + $0xe0] sm:$0xff] %v1523_v27  ;;  %v1274_v36 = vadd.f32 %v2425_v63, %v666_v33 }
 0x162   : > { %1305 = vst [vmem:[#allocation2 + $0xc8] sm:$0xff] %v1273_v32 }
 0x163   : > { %v1525_v37 = vmax.f32 %v1272_v34, 0.0  ;;  %v557_v38 = vpop.f32.mrb[14].mxu0  ;;  %v1527_v39 = vmax.f32 %v1274_v36, 0.0  ;;  %v670_v41 = vpop.f32.mrb[14].mxu1 }
 0x164   : > { %v1202_v40 = vadd.f32 %v1201_v29, %v557_v38  ;;  %v559_v42 = vpop.f32.mrb[15].mxu0  ;;  %v1277_v44 = vadd.f32 %v2417_v9, %v670_v41  ;;  %v672_v45 = vpop.f32.mrb[15].mxu1 }
 0x165   : > { %1557 = vst [vmem:[%s2433_s18 + $0xf8] sm:$0xff] %v1525_v37  ;;  %v1276_v47 = vadd.f32 %v2422_v22, %v559_v42  ;;  %1559 = vst [vmem:[%s2433_s18 + $0x108] sm:$0xff] %v1527_v39  ;;  %v1278_v50 = vadd.f32 %v2425_v63, %v672_v45 }
 0x166   : > { %v1203_v48 = vrot.slane %v1202_v40, 4  ;;  %1309 = vst [vmem:[#allocation2 + $0xe8] sm:$0xff] %v1277_v44 }
 0x167   : > { %v1529_v51 = vmax.f32 %v1276_v47, 0.0  ;;  %v741_v52 = vpop.f32.mrb[16].mxu0  ;;  %v1531_v54 = vmax.f32 %v1278_v50, 0.0  ;;  %v848_v55 = vpop.f32.mrb[16].mxu1 }
 0x168   : > { %v1204_v53 = vadd.f32 %v1203_v48, %v1202_v40  ;;  %v1251_v49 = vadd.f32 %v2467_v43, %v741_v52  ;;  %v743_v56 = vpop.f32.mrb[17].mxu0  ;;  %v2476_v57 = vpop.f32.mrb[17].mxu1 }
 0x169   : > { %1561 = vst [vmem:[%s2433_s18 + $0x120] sm:$0xff] %v1529_v51  ;;  %v1317_v9 = vrot.slane %v743_v56, 2  ;;  %1563 = vst [vmem:[%s2433_s18 + $0x130] sm:$0xff] %v1531_v54  ;;  %v1313_v60 = vld [vmem:[#allocation2 + $0xc8] sm:$0xc0]  ;;  %v1335_v41 = vrot.slane %v2476_v57, 6 }
 0x16a   : > { %v1205_v22 = vrot.slane %v1204_v53, 2  ;;  %v1504_v58 = vmax.f32 %v1251_v49, 0.0 }
 0x16b   : > { %v1321_v61 = vadd.f32 %v1317_v9, %v1313_v60  ;;  %v747_v63 = vpop.f32.mrb[18].mxu0  ;;  %v854_v2 = vpop.f32.mrb[18].mxu1 }
 0x16c   : > { %v1206_v62 = vadd.f32 %v1205_v22, %v1204_v53  ;;  %1536 = vst [vmem:[%s2433_s18 + $0x20] sm:$0xff] %v1504_v58  ;;  %v1255_v1 = vadd.f32 %v2467_v43, %v747_v63  ;;  %v749_v3 = vpop.f32.mrb[19].mxu0  ;;  %v2481_v5 = vpop.f32.mrb[19].mxu1 }
 0x16d   : > { %1323 = vst [vmem:[#allocation2 + $0xc8] sm:$0xc0] %v1321_v61  ;;  %v1318_v4 = vrot.slane %v749_v3, 2  ;;  %v1314_v8 = vld [vmem:[#allocation2 + $0xe8] sm:$0xc0]  ;;  %v1336_v53 = vrot.slane %v2481_v5, 6 }
 0x16e   : > { %v1207_v6 = vrot.slane %v1206_v62, 1  ;;  %v1508_v7 = vmax.f32 %v1255_v1, 0.0  ;;  %v1343_v3 = vld [vmem:[#allocation2 + $0x8] sm:$0xc0] }
 0x16f   : > { %v1322_v10 = vadd.f32 %v1318_v4, %v1314_v8  ;;  %v753_v11 = vpop.f32.mrb[20].mxu0  ;;  %v860_v13 = vpop.f32.mrb[20].mxu1 }
 0x170   : > { %v1208_v12 = vadd.f32 %v1207_v6, %v1206_v62  ;;  %1540 = vst [vmem:[%s2433_s18 + $0x48] sm:$0xff] %v1508_v7  ;;  %v1259_v15 = vadd.f32 %v2467_v43, %v753_v11  ;;  %v755_v16 = vpop.f32.mrb[21].mxu0  ;;  %v861_v18 = vpop.f32.mrb[21].mxu1  ;;  %v1391_v7 = vld [vmem:[#allocation2 + $0x8] sm:$0x3] }
 0x171   : > { %1324 = vst [vmem:[#allocation2 + $0xe8] sm:$0xc0] %v1322_v10  ;;  %v1344_v13 = vld [vmem:[#allocation2 + $0x28] sm:$0xc0]  ;;  %v1392_v18 = vld [vmem:[#allocation2 + $0x28] sm:$0x3] }
 0x172   : > { %v1210_v19 = vmul.f32 0.015625, %v1208_v12  ;;  %v1512_v20 = vmax.f32 %v1259_v15, 0.0 }
 0x173   : > { %v758_v21 = vpop.f32.mrb[22].mxu0  ;;  %v864_v25 = vpop.f32.mrb[22].mxu1 }
 0x174   : > { %v1212_v23 = vadd.f32 %v1211_v17, %v1210_v19  ;;  %v1325_v24 = vld [vmem:[#allocation2 + $0xc8] sm:$0xff]  ;;  %1544 = vst [vmem:[%s2433_s18 + $0x70] sm:$0xff] %v1512_v20  ;;  %v1263_v0 = vadd.f32 %v2467_v43, %v758_v21  ;;  %v760_v46 = vpop.f32.mrb[23].mxu0  ;;  %v865_v14 = vpop.f32.mrb[23].mxu1 }
 0x175   : > { %v1327_v59 = vadd.f32 %v1325_v24, %v848_v55  ;;  %v1345_v25 = vld [vmem:[#allocation2 + $0x48] sm:$0xc0]  ;;  %v1393_v14 = vld [vmem:[#allocation2 + $0x48] sm:$0x3] }
 0x176   : > { %v1213_v27 = vmax.f32 %v1212_v23, 0.0  ;;  %v1516_v28 = vmax.f32 %v1263_v0, 0.0 }
 0x177   : > { %1329 = vst [vmem:[#allocation2 + $0xc8] sm:$0xff] %v1327_v59  ;;  %v763_v29 = vpop.f32.mrb[24].mxu0  ;;  %v868_v32 = vpop.f32.mrb[24].mxu1 }
 0x178   : > { %v1217_v30 = vrot.slane %v1213_v27, %v1216_v35  ;;  %v1326_v31 = vld [vmem:[#allocation2 + $0xe8] sm:$0xff]  ;;  %1548 = vst [vmem:[%s2433_s18 + $0x98] sm:$0xff] %v1516_v28  ;;  %v1267_v33 = vadd.f32 %v2467_v43, %v763_v29  ;;  %v765_v34 = vpop.f32.mrb[25].mxu0  ;;  %v869_v37 = vpop.f32.mrb[25].mxu1 }
 0x179   : > { %v1328_v36 = vadd.f32 %v1326_v31, %v854_v2  ;;  %v1346_v32 = vld [vmem:[#allocation2 + $0x68] sm:$0xc0]  ;;  %v1394_v37 = vld [vmem:[#allocation2 + $0x68] sm:$0x3] }
 0x17a   : > { %1218 = vst [vmem:[%s2433_s18] sm:$0xff] %v1217_v30  ;;  %1219 = vst [vmem:[%s2433_s18 + $0x28] sm:$0xff] %v1217_v30  ;;  %v1520_v26 = vmax.f32 %v1267_v33, 0.0 }
 0x17b   : > { %1220 = vst [vmem:[%s2433_s18 + $0x50] sm:$0xff] %v1217_v30  ;;  %1221 = vst [vmem:[%s2433_s18 + $0x78] sm:$0xff] %v1217_v30  ;;  %v768_v35 = vpop.f32.mrb[26].mxu0  ;;  %v872_v38 = vpop.f32.mrb[26].mxu1 }
 0x17c   : > { %1222 = vst [vmem:[%s2433_s18 + $0xa0] sm:$0xff] %v1217_v30  ;;  %1223 = vst [vmem:[%s2433_s18 + $0xc8] sm:$0xff] %v1217_v30  ;;  %v1271_v39 = vadd.f32 %v2467_v43, %v768_v35  ;;  %v770_v40 = vpop.f32.mrb[27].mxu0  ;;  %v873_v42 = vpop.f32.mrb[27].mxu1 }
 0x17d   : > { %1224 = vst [vmem:[%s2433_s18 + $0xf0] sm:$0xff] %v1217_v30  ;;  %1225 = vst [vmem:[%s2433_s18 + $0x118] sm:$0xff] %v1217_v30 }
 0x17e   : > { %1330 = vst [vmem:[#allocation2 + $0xe8] sm:$0xff] %v1328_v36  ;;  %1552 = vst [vmem:[%s2433_s18 + $0xc0] sm:$0xff] %v1520_v26  ;;  %v1331_v44 = vld [vmem:[#allocation2 + $0xc8] sm:$0x3]  ;;  %v1524_v45 = vmax.f32 %v1271_v39, 0.0 }
 0x17f   : > { %v1339_v47 = vadd.f32 %v1335_v41, %v1331_v44  ;;  %v773_v48 = vpop.f32.mrb[28].mxu0  ;;  %v876_v50 = vpop.f32.mrb[28].mxu1  ;;  %v1347_v41 = vld [vmem:[#allocation2 + $0x88] sm:$0xc0] }
 0x180   : > { %1556 = vst [vmem:[%s2433_s18 + $0xe8] sm:$0xff] %v1524_v45  ;;  %v1275_v51 = vadd.f32 %v2467_v43, %v773_v48  ;;  %v775_v52 = vpop.f32.mrb[29].mxu0  ;;  %v877_v54 = vpop.f32.mrb[29].mxu1 }
 0x181   : > { %1341 = vst [vmem:[#allocation2 + $0xc8] sm:$0x3] %v1339_v47  ;;  %v1395_v47 = vld [vmem:[#allocation2 + $0x88] sm:$0x3] }
 0x182   : > { %v1528_v55 = vmax.f32 %v1275_v51, 0.0 }
 0x183   : > { %v778_v9 = vpop.f32.mrb[30].mxu0  ;;  %v880_v57 = vpop.f32.mrb[30].mxu1 }
 0x184   : > { %1560 = vst [vmem:[%s2433_s18 + $0x110] sm:$0xff] %v1528_v55  ;;  %v1279_v22 = vadd.f32 %v2467_v43, %v778_v9  ;;  %v780_v58 = vpop.f32.mrb[31].mxu0  ;;  %v881_v60 = vpop.f32.mrb[31].mxu1  ;;  %v1348_v55 = vld [vmem:[#allocation2 + $0xa8] sm:$0xc0] }
 0x185   : > { %v1332_v49 = vld [vmem:[#allocation2 + $0xe8] sm:$0x3] }
 0x186   : > { %v1340_v56 = vadd.f32 %v1336_v53, %v1332_v49  ;;  %v1532_v61 = vmax.f32 %v1279_v22, 0.0  ;;  %v1396_v22 = vld [vmem:[#allocation2 + $0xa8] sm:$0x3] }
 0x187   : > { %v949_v63 = vpop.f32.mrb[32].mxu0  ;;  %v1062_v1 = vpop.f32.mrb[32].mxu1 }
 0x188   : > { %1342 = vst [vmem:[#allocation2 + $0xe8] sm:$0x3] %v1340_v56  ;;  %1564 = vst [vmem:[%s2433_s18 + $0x138] sm:$0xff] %v1532_v61  ;;  %v1359_v62 = vrot.slane %v949_v63, 2  ;;  %v951_v2 = vpop.f32.mrb[33].mxu0  ;;  %v1063_v5 = vpop.f32.mrb[33].mxu1 }
 0x189   : > { %v1407_v4 = vrot.slane %v951_v2, 6 }
 0x18a   : > { %v1375_v6 = vadd.f32 %v1359_v62, %v1343_v3  ;;  %v1349_v3 = vld [vmem:[#allocation2 + $0xc8] sm:$0xc0] }
 0x18b   : > { %v1423_v8 = vadd.f32 %v1407_v4, %v1391_v7  ;;  %v955_v10 = vpop.f32.mrb[34].mxu0  ;;  %v1066_v12 = vpop.f32.mrb[34].mxu1 }
 0x18c   : > { %1383 = vst [vmem:[#allocation2 + $0x8] sm:$0xc0] %v1375_v6  ;;  %v1360_v11 = vrot.slane %v955_v10, 2  ;;  %v957_v43 = vpop.f32.mrb[35].mxu0  ;;  %v1067_v16 = vpop.f32.mrb[35].mxu1 }
 0x18d   : > { %1431 = vst [vmem:[#allocation2 + $0x8] sm:$0x3] %v1423_v8  ;;  %v1408_v15 = vrot.slane %v957_v43, 6  ;;  %v1397_v10 = vld [vmem:[#allocation2 + $0xc8] sm:$0x3] }
 0x18e   : > { %v1376_v17 = vadd.f32 %v1360_v11, %v1344_v13 }
 0x18f   : > { %v1424_v19 = vadd.f32 %v1408_v15, %v1392_v18  ;;  %v961_v20 = vpop.f32.mrb[36].mxu0  ;;  %v1070_v23 = vpop.f32.mrb[36].mxu1 }
 0x190   : > { %1384 = vst [vmem:[#allocation2 + $0x28] sm:$0xc0] %v1376_v17  ;;  %v1361_v21 = vrot.slane %v961_v20, 2  ;;  %v963_v24 = vpop.f32.mrb[37].mxu0  ;;  %v1071_v46 = vpop.f32.mrb[37].mxu1 }
 0x191   : > { %1432 = vst [vmem:[#allocation2 + $0x28] sm:$0x3] %v1424_v19  ;;  %v1409_v0 = vrot.slane %v963_v24, 6  ;;  %v1350_v19 = vld [vmem:[#allocation2 + $0xe8] sm:$0xc0] }
 0x192   : > { %v1377_v59 = vadd.f32 %v1361_v21, %v1345_v25 }
 0x193   : > { %v1425_v27 = vadd.f32 %v1409_v0, %v1393_v14  ;;  %v967_v28 = vpop.f32.mrb[38].mxu0  ;;  %v1074_v30 = vpop.f32.mrb[38].mxu1  ;;  %v1439_v8 = vld [vmem:[#allocation2 + $0x8] sm:$0xc0]  ;;  %v1398_v0 = vld [vmem:[#allocation2 + $0xe8] sm:$0x3] }
 0x194   : > { %1385 = vst [vmem:[#allocation2 + $0x48] sm:$0xc0] %v1377_v59  ;;  %v1362_v29 = vrot.slane %v967_v28, 2  ;;  %v969_v31 = vpop.f32.mrb[39].mxu0  ;;  %v1075_v34 = vpop.f32.mrb[39].mxu1 }
 0x195   : > { %1433 = vst [vmem:[#allocation2 + $0x48] sm:$0x3] %v1425_v27  ;;  %v1410_v33 = vrot.slane %v969_v31, 6 }
 0x196   : > { %v1378_v36 = vadd.f32 %v1362_v29, %v1346_v32 }
 0x197   : > { %v1426_v26 = vadd.f32 %v1410_v33, %v1394_v37  ;;  %v973_v35 = vpop.f32.mrb[40].mxu0  ;;  %v1078_v39 = vpop.f32.mrb[40].mxu1  ;;  %v1440_v25 = vld [vmem:[#allocation2 + $0x28] sm:$0xc0] }
 0x198   : > { %1386 = vst [vmem:[#allocation2 + $0x68] sm:$0xc0] %v1378_v36  ;;  %v1363_v38 = vrot.slane %v973_v35, 2  ;;  %v975_v40 = vpop.f32.mrb[41].mxu0  ;;  %v1079_v44 = vpop.f32.mrb[41].mxu1 }
 0x199   : > { %1434 = vst [vmem:[#allocation2 + $0x68] sm:$0x3] %v1426_v26  ;;  %v1411_v42 = vrot.slane %v975_v40, 6 }
 0x19a   : > { %v1379_v45 = vadd.f32 %v1363_v38, %v1347_v41 }
 0x19b   : > { %v1427_v48 = vadd.f32 %v1411_v42, %v1395_v47  ;;  %v979_v50 = vpop.f32.mrb[42].mxu0  ;;  %v1082_v53 = vpop.f32.mrb[42].mxu1 }
 0x19c   : > { %v1478_v51 = vld [vmem:[#allocation2 + $0x48] sm:$0xff]  ;;  %1387 = vst [vmem:[#allocation2 + $0x88] sm:$0xc0] %v1379_v45  ;;  %v1364_v52 = vrot.slane %v979_v50, 2  ;;  %v981_v54 = vpop.f32.mrb[43].mxu0  ;;  %v1083_v9 = vpop.f32.mrb[43].mxu1 }
 0x19d   : > { %v1510_v49 = vmax.f32 %v1478_v51, 0.0  ;;  %1435 = vst [vmem:[#allocation2 + $0x88] sm:$0x3] %v1427_v48  ;;  %v1412_v56 = vrot.slane %v981_v54, 6 }
 0x19e   : > { %v1380_v57 = vadd.f32 %v1364_v52, %v1348_v55 }
 0x19f   : > { %1542 = vst [vmem:[%s2433_s18 + $0x60] sm:$0xff] %v1510_v49  ;;  %v1428_v58 = vadd.f32 %v1412_v56, %v1396_v22  ;;  %v985_v60 = vpop.f32.mrb[44].mxu0  ;;  %v1086_v62 = vpop.f32.mrb[44].mxu1 }
 0x1a0   : > { %v1482_v61 = vld [vmem:[#allocation2 + $0x68] sm:$0xff]  ;;  %1388 = vst [vmem:[#allocation2 + $0xa8] sm:$0xc0] %v1380_v57  ;;  %v1365_v63 = vrot.slane %v985_v60, 2  ;;  %v987_v1 = vpop.f32.mrb[45].mxu0  ;;  %v1443_v4 = vrot.slane %v1086_v62, 2 }
 0x1a1   : > { %v1514_v2 = vmax.f32 %v1482_v61, 0.0  ;;  %1436 = vst [vmem:[#allocation2 + $0xa8] sm:$0x3] %v1428_v58  ;;  %v1413_v5 = vrot.slane %v987_v1, 6  ;;  %v1088_v6 = vpop.f32.mrb[45].mxu1 }
 0x1a2   : > { %v1381_v7 = vadd.f32 %v1365_v63, %v1349_v3  ;;  %v1447_v11 = vadd.f32 %v1443_v4, %v1439_v8 }
 0x1a3   : > { %1546 = vst [vmem:[%s2433_s18 + $0x88] sm:$0xff] %v1514_v2  ;;  %v1429_v12 = vadd.f32 %v1413_v5, %v1397_v10  ;;  %v991_v43 = vpop.f32.mrb[46].mxu0  ;;  %v1092_v16 = vpop.f32.mrb[46].mxu1 }
 0x1a4   : > { %v1486_v13 = vld [vmem:[#allocation2 + $0x88] sm:$0xff]  ;;  %1389 = vst [vmem:[#allocation2 + $0xc8] sm:$0xc0] %v1381_v7  ;;  %v1366_v15 = vrot.slane %v991_v43, 2  ;;  %v993_v17 = vpop.f32.mrb[47].mxu0  ;;  %v1444_v20 = vrot.slane %v1092_v16, 2 }
 0x1a5   : > { %v1518_v18 = vmax.f32 %v1486_v13, 0.0  ;;  %1449 = vst [vmem:[#allocation2 + $0x8] sm:$0xc0] %v1447_v11  ;;  %1437 = vst [vmem:[#allocation2 + $0xc8] sm:$0x3] %v1429_v12  ;;  %v1414_v21 = vrot.slane %v993_v17, 6 }
 0x1a6   : > { %v1094_v23 = vpop.f32.mrb[47].mxu1  ;;  %v1382_v24 = vadd.f32 %v1366_v15, %v1350_v19  ;;  %v1448_v46 = vadd.f32 %v1444_v20, %v1440_v25 }
 0x1a7   : > { %1550 = vst [vmem:[%s2433_s18 + $0xb0] sm:$0xff] %v1518_v18  ;;  %v1430_v59 = vadd.f32 %v1414_v21, %v1398_v0 }
 0x1a8   : > { %v1490_v14 = vld [vmem:[#allocation2 + $0xa8] sm:$0xff]  ;;  %1390 = vst [vmem:[#allocation2 + $0xe8] sm:$0xc0] %v1382_v24  ;;  %v1720_v27 = vpop.f32.mrb[48].mxu1  ;;  %1450 = vst [vmem:[#allocation2 + $0x28] sm:$0xc0] %v1448_v46 }
 0x1a9   : > { %v1522_v28 = vmax.f32 %v1490_v14, 0.0  ;;  %1438 = vst [vmem:[#allocation2 + $0xe8] sm:$0x3] %v1430_v59  ;;  %v1179_v29 = vpop.f32.mrb[49].mxu1  ;;  %v1714_v30 = vpop.f32.mrb[48].mxu0 }
 0x1aa   : > { %v1163_v31 = vpop.f32.mrb[49].mxu0 }
 0x1ab   : > { %1554 = vst [vmem:[%s2433_s18 + $0xd8] sm:$0xff] %v1522_v28 }
 0x1ac   : > { %v1494_v32 = vld [vmem:[#allocation2 + $0xc8] sm:$0xff]  ;;  %v1723_v34 = vpop.f32.mrb[50].mxu1  ;;  %v1717_v35 = vpop.f32.mrb[50].mxu0 }
 0x1ad   : > { %v1451_v33 = vld [vmem:[#allocation2 + $0x8] sm:$0xff]  ;;  %v1526_v36 = vmax.f32 %v1494_v32, 0.0  ;;  %v1187_v26 = vpop.f32.mrb[51].mxu1  ;;  %v1171_v38 = vpop.f32.mrb[51].mxu0  ;;  %v1462_v47 = vrot.slane %v1723_v34, 6 }
 0x1ae   : > { %v1453_v37 = vadd.f32 %v1451_v33, %v1088_v6  ;;  %v1461_v44 = vrot.slane %v1187_v26, 6 }
 0x1af   : > { %1558 = vst [vmem:[%s2433_s18 + $0x100] sm:$0xff] %v1526_v36  ;;  %v1452_v40 = vld [vmem:[#allocation2 + $0x28] sm:$0xff] }
 0x1b0   : > { %1455 = vst [vmem:[#allocation2 + $0x8] sm:$0xff] %v1453_v37  ;;  %v1498_v39 = vld [vmem:[#allocation2 + $0xe8] sm:$0xff]  ;;  %v1454_v42 = vadd.f32 %v1452_v40, %v1094_v23 }
 0x1b1   : > { %v1530_v41 = vmax.f32 %v1498_v39, 0.0 }
 0x1b2   : > { %1456 = vst [vmem:[#allocation2 + $0x28] sm:$0xff] %v1454_v42 }
 0x1b3   : > { %1562 = vst [vmem:[%s2433_s18 + $0x128] sm:$0xff] %v1530_v41 }
 0x1b7   : > { %v1457_v45 = vld [vmem:[#allocation2 + $0x8] sm:$0x3] }
 0x1b8   : > { %v1465_v48 = vadd.f32 %v1461_v44, %v1457_v45 }
 0x1b9   : > { %v1458_v50 = vld [vmem:[#allocation2 + $0x28] sm:$0x3] }
 0x1ba   : > { %1467 = vst [vmem:[#allocation2 + $0x8] sm:$0x3] %v1465_v48  ;;  %v1466_v51 = vadd.f32 %v1462_v47, %v1458_v50 }
 0x1bc   : > { %1468 = vst [vmem:[#allocation2 + $0x28] sm:$0x3] %v1466_v51 }
 0x1c1   : > { %v1470_v52 = vld [vmem:[#allocation2 + $0x8] sm:$0xff] }
 0x1c2   : > { %v1502_v53 = vmax.f32 %v1470_v52, 0.0 }
 0x1c3   : > { %v1474_v54 = vld [vmem:[#allocation2 + $0x28] sm:$0xff] }
 0x1c4   : > { %1534 = vst [vmem:[%s2433_s18 + $0x10] sm:$0xff] %v1502_v53  ;;  %v1506_v49 = vmax.f32 %v1474_v54, 0.0 }
 0x1c6   : > { %1538 = vst [vmem:[%s2433_s18 + $0x38] sm:$0xff] %v1506_v49 }
 0x1c7 PF: > { %p15_p8 = scmp.ge.s32.totalorder %s2194_s25, 4   ;;  %s2548_s15 = smov %s2108_s16 }
 0x1c8   : > { %s2549_s16 = smov %s2112_s17  ;;  %s2550_s17 = smov %s2220_s14 }
 0x1c9   : > { %s2551_s18 = smov %s2194_s25  ;;  %17 = sbr.rel (!%p15_p8) target bundleno = 4 (0x4), region = 81 }
 0x1d0   :  { %1586 = vsyncpa [#allocation4], 1 }
 0x1d1   :  { %1588 = vsyncpa [#allocation4 + $0x1], 1 }
 0x1d2   :  { %1589 = vsyncpa [#allocation6], 1 }

</bundles_post_ra>
